<compile_context>
chip_gen: v7x
topology: tpu7x:2x2x1
jax: 0.10.0
libtpu: 0.0.40
codegen_flags: <defaults>
</compile_context>

<pallas_src>
import jax
import jax.numpy as jnp
from jax.experimental import pallas as pl
from jax.experimental.pallas import tpu as pltpu


def _make_conv3x3_relu_kernel(B, H, W, CI, CO):
    HW = H * W

    def kernel(img_ref, canny_ref, w_ref, b_ref, o_ref):
        # img_ref, canny_ref: (B, HW)  f32 VMEM  (lane-dense flat spatial axis)
        # w_ref:              (CO, 9*CI) f32 VMEM (per-(tap, ci) weight columns)
        # b_ref:              (CO, 1)  f32 VMEM
        # o_ref:              (B, CO, HW) f32 VMEM (NCHW-ordered, lane-dense)

        # --- static pad=1 validity masks, computed once (hoisted) -------------
        pos = jax.lax.broadcasted_iota(jnp.int32, (1, HW), 1)
        col = pos % W
        not_top = pos >= W            # output row h >= 1     (needed for dh = -1)
        not_bot = pos < HW - W        # output row h <= H-2   (needed for dh = +1)
        not_left = col != 0           # output col w >= 1     (needed for dw = -1)
        not_right = col != W - 1      # output col w <= W-2   (needed for dw = +1)

        def tap_mask(dh, dw):
            m = None
            for cond, need in ((not_top, dh == -1), (not_bot, dh == 1),
                               (not_left, dw == -1), (not_right, dw == 1)):
                if need:
                    m = cond if m is None else (m & cond)
            return m

        bias_col = b_ref[...]                                   # (CO, 1)

        for b in range(B):                     # static unroll; rows independent
            rows = (img_ref[b:b + 1, :], canny_ref[b:b + 1, :])  # (1, HW) each
            acc = jnp.zeros((CO, HW), jnp.float32)

            # 3x3 taps, fully unrolled.  Off-center taps come from an XLU roll
            # of the flat row; wrapped elements always land on a masked column/row.
            for kh in range(3):                # dh = kh - 1
                dh = kh - 1
                for kw in range(3):            # dw = kw - 1
                    dw = kw - 1
                    off = dh * W + dw          # flat tap offset
                    shift = (-off) % HW        # pltpu.roll == np.roll convention
                    mask = tap_mask(dh, dw)
                    for ci in range(CI):
                        r = rows[ci]
                        if off != 0:
                            r = pltpu.roll(r, shift, 1)       # XLU lane rotate
                        if mask is not None:
                            r = jnp.where(mask, r, 0.0)
                        t = (kh * 3 + kw) * CI + ci
                        # (1, HW) * (CO, 1) -> (CO, HW): one vector MAC per tap/ci.
                        acc = acc + r * w_ref[:, t:t + 1]

            # Bias + ReLU, one lane-dense store of the whole (CO, HW) slab.
            o_ref[b] = jnp.maximum(acc + bias_col, 0.0)

    return kernel


@jax.jit
def conv3x3_relu_pallas(img, canny, weight, bias):
    """img, canny: (B, 1, H, W) f32; weight: (CO, CI, 3, 3) f32 (OIHW); bias: (CO,)."""
    B, _, H, W = img.shape
    CO, CI, KH, KW = weight.shape
    HW = H * W

    img_flat = img.reshape(B, HW)       # free reshape; the channel concat is
    canny_flat = canny.reshape(B, HW)   # fused into the kernel (two flat planes)
    # (CO, CI, 3, 3) -> (CO, kh, kw, ci) -> (CO, 9*CI): per-(tap, ci) columns.
    w_cols = jnp.transpose(weight, (0, 2, 3, 1)).reshape(CO, KH * KW * CI)
    b_col = bias.reshape(CO, 1)

    out_flat = pl.pallas_call(
        _make_conv3x3_relu_kernel(B, H, W, CI, CO),
        out_shape=jax.ShapeDtypeStruct((B, CO, HW), jnp.float32),
        in_specs=[
            pl.BlockSpec(memory_space=pltpu.MemorySpace.VMEM),   # img plane
            pl.BlockSpec(memory_space=pltpu.MemorySpace.VMEM),   # canny plane
            pl.BlockSpec(memory_space=pltpu.MemorySpace.VMEM),   # weight columns
            pl.BlockSpec(memory_space=pltpu.MemorySpace.VMEM),   # bias column
        ],
        out_specs=pl.BlockSpec(memory_space=pltpu.MemorySpace.VMEM),
    )(img_flat, canny_flat, w_cols, b_col)

    # (B, CO, H*W) -> (B, CO, H, W): contiguous reshape, already NCHW.
    return out_flat.reshape(B, CO, H, W)


class DummyNetPallas:
    """JAX/Pallas port of DummyNet: cat([img, canny], 1) -> Conv2d(2, co, 3, pad=1) -> ReLU."""

    def __init__(self, co, key):
        ci = 2
        k_w, k_b = jax.random.split(key)
        fan_in = ci * 3 * 3
        bound = 1.0 / (fan_in ** 0.5)
        # PyTorch Conv2d layout: (out_channels, in_channels, kh, kw).
        self.weight = jax.random.uniform(
            k_w, (co, ci, 3, 3), jnp.float32, minval=-bound, maxval=bound)
        self.bias = jax.random.uniform(
            k_b, (co,), jnp.float32, minval=-bound, maxval=bound)

    def __call__(self, img, canny):
        # img, canny: NCHW (B, 1, H, W) f32 -- same convention as the PyTorch module.
        y = conv3x3_relu_pallas(img, canny, self.weight, self.bias)
        # Matches: return (x, x[:, 0, :, :].unsqueeze(1), x, x)
        return (y, y[:, 0:1, :, :], y, y)


def _reference_conv3x3_relu(x_nchw, weight_oihw, bias):
    # Pure-JAX reference (lax.conv) to verify the Pallas kernel.
    y = jax.lax.conv_general_dilated(
        x_nchw, weight_oihw, window_strides=(1, 1), padding=((1, 1), (1, 1)),
        dimension_numbers=("NCHW", "OIHW", "NCHW"))
    return jnp.maximum(y + bias.reshape(1, -1, 1, 1), 0.0)


if __name__ == "__main__":
    co = 4
    B, H, W = 2, 16, 16

    key = jax.random.PRNGKey(0)
    k_img, k_canny, k_params = jax.random.split(key, 3)
    img = jax.random.normal(k_img, (B, 1, H, W), jnp.float32)
    canny = jax.random.normal(k_canny, (B, 1, H, W), jnp.float32)

    net = DummyNetPallas(co, k_params)
    outs = jax.block_until_ready(net(img, canny))

    # Sanity check against a pure-JAX reference.
    x_cat = jnp.concatenate([img, canny], axis=1)
    ref = _reference_conv3x3_relu(x_cat, net.weight, net.bias)
    assert outs[0].shape == (B, co, H, W)
    assert outs[1].shape == (B, 1, H, W)
    assert jnp.allclose(outs[0], ref, atol=1e-5), "mismatch vs reference conv"
    assert jnp.allclose(outs[1], ref[:, 0:1], atol=1e-5)
    assert jnp.allclose(outs[2], ref, atol=1e-5)
    assert jnp.allclose(outs[3], ref, atol=1e-5)

    print("KERNEL_OK")
</pallas_src>

<mosaic_0001>
module attributes {stable_mosaic.version = 11 : i64} {
  func.func @kernel(%arg0: memref<2x256xf32, #tpu.memory_space<vmem>>, %arg1: memref<2x256xf32, #tpu.memory_space<vmem>>, %arg2: memref<4x18xf32, #tpu.memory_space<vmem>>, %arg3: memref<4x1xf32, #tpu.memory_space<vmem>>, %arg4: memref<2x4x256xf32, #tpu.memory_space<vmem>>) attributes {dimension_semantics = [], scalar_prefetch = 0 : i64, scratch_operands = 0 : i64, tpu.core_type = #tpu.core_type<tc>} {
    %0 = tpu.iota {dimensions = array<i32: 1>} : vector<1x256xi32>
    %c16_i32 = arith.constant 16 : i32
    %c0_i32 = arith.constant 0 : i32
    %1 = arith.cmpi eq, %c16_i32, %c0_i32 : i32
    %c1_i32 = arith.constant 1 : i32
    %2 = arith.select %1, %c1_i32, %c16_i32 : i32
    %3 = vector.broadcast %2 : i32 to vector<1x256xi32>
    %4 = arith.remsi %0, %3 : vector<1x256xi32>
    %c0_i32_0 = arith.constant 0 : i32
    %5 = vector.broadcast %c0_i32_0 : i32 to vector<1x256xi32>
    %6 = arith.cmpi ne, %4, %5 : vector<1x256xi32>
    %c0_i32_1 = arith.constant 0 : i32
    %7 = vector.broadcast %c0_i32_1 : i32 to vector<1x256xi32>
    %8 = arith.cmpi slt, %4, %7 : vector<1x256xi32>
    %c0_i32_2 = arith.constant 0 : i32
    %9 = arith.cmpi slt, %2, %c0_i32_2 : i32
    %10 = vector.broadcast %9 : i1 to vector<1x256xi1>
    %11 = vector.broadcast %10 : vector<1x256xi1> to vector<1x256xi1>
    %12 = arith.xori %8, %11 : vector<1x256xi1>
    %13 = arith.andi %12, %6 : vector<1x256xi1>
    %14 = vector.broadcast %2 : i32 to vector<1x256xi32>
    %15 = arith.addi %4, %14 : vector<1x256xi32>
    %16 = arith.select %13, %15, %4 : vector<1x256xi1>, vector<1x256xi32>
    %c16_i32_3 = arith.constant 16 : i32
    %17 = vector.broadcast %c16_i32_3 : i32 to vector<1x256xi32>
    %18 = arith.cmpi sge, %0, %17 : vector<1x256xi32>
    %c240_i32 = arith.constant 240 : i32
    %19 = vector.broadcast %c240_i32 : i32 to vector<1x256xi32>
    %20 = arith.cmpi slt, %0, %19 : vector<1x256xi32>
    %c0_i32_4 = arith.constant 0 : i32
    %21 = vector.broadcast %c0_i32_4 : i32 to vector<1x256xi32>
    %22 = arith.cmpi ne, %16, %21 : vector<1x256xi32>
    %c15_i32 = arith.constant 15 : i32
    %23 = vector.broadcast %c15_i32 : i32 to vector<1x256xi32>
    %24 = arith.cmpi ne, %16, %23 : vector<1x256xi32>
    %c0 = arith.constant 0 : index
    %c0_5 = arith.constant 0 : index
    %25 = vector.load %arg3[%c0, %c0_5] : memref<4x1xf32, #tpu.memory_space<vmem>>, vector<4x1xf32>
    %c0_6 = arith.constant 0 : index
    %c0_7 = arith.constant 0 : index
    %26 = vector.load %arg0[%c0_6, %c0_7] : memref<2x256xf32, #tpu.memory_space<vmem>>, vector<1x256xf32>
    %c0_8 = arith.constant 0 : index
    %c0_9 = arith.constant 0 : index
    %27 = vector.load %arg1[%c0_8, %c0_9] : memref<2x256xf32, #tpu.memory_space<vmem>>, vector<1x256xf32>
    %cst = arith.constant 0.000000e+00 : f32
    %28 = vector.broadcast %cst : f32 to vector<4x256xf32>
    %29 = arith.andi %18, %22 : vector<1x256xi1>
    %c17_i32 = arith.constant 17 : i32
    %30 = tpu.dynamic_rotate %26 by %c17_i32 dim 1 : vector<1x256xf32>, i32 -> vector<1x256xf32>
    %cst_10 = arith.constant 0.000000e+00 : f32
    %31 = vector.broadcast %cst_10 : f32 to vector<1x256xf32>
    %32 = arith.select %29, %30, %31 : vector<1x256xi1>, vector<1x256xf32>
    %c0_11 = arith.constant 0 : index
    %c0_12 = arith.constant 0 : index
    %33 = vector.load %arg2[%c0_11, %c0_12] : memref<4x18xf32, #tpu.memory_space<vmem>>, vector<4x1xf32>
    %34 = vector.broadcast %32 : vector<1x256xf32> to vector<4x256xf32>
    %35 = vector.broadcast %33 : vector<4x1xf32> to vector<4x256xf32>
    %36 = arith.mulf %34, %35 : vector<4x256xf32>
    %37 = arith.addf %28, %36 : vector<4x256xf32>
    %c17_i32_13 = arith.constant 17 : i32
    %38 = tpu.dynamic_rotate %27 by %c17_i32_13 dim 1 : vector<1x256xf32>, i32 -> vector<1x256xf32>
    %cst_14 = arith.constant 0.000000e+00 : f32
    %39 = vector.broadcast %cst_14 : f32 to vector<1x256xf32>
    %40 = arith.select %29, %38, %39 : vector<1x256xi1>, vector<1x256xf32>
    %c0_15 = arith.constant 0 : index
    %c1 = arith.constant 1 : index
    %41 = vector.load %arg2[%c0_15, %c1] : memref<4x18xf32, #tpu.memory_space<vmem>>, vector<4x1xf32>
    %42 = vector.broadcast %40 : vector<1x256xf32> to vector<4x256xf32>
    %43 = vector.broadcast %41 : vector<4x1xf32> to vector<4x256xf32>
    %44 = arith.mulf %42, %43 : vector<4x256xf32>
    %45 = arith.addf %37, %44 : vector<4x256xf32>
    %c16_i32_16 = arith.constant 16 : i32
    %46 = tpu.dynamic_rotate %26 by %c16_i32_16 dim 1 : vector<1x256xf32>, i32 -> vector<1x256xf32>
    %cst_17 = arith.constant 0.000000e+00 : f32
    %47 = vector.broadcast %cst_17 : f32 to vector<1x256xf32>
    %48 = arith.select %18, %46, %47 : vector<1x256xi1>, vector<1x256xf32>
    %c0_18 = arith.constant 0 : index
    %c2 = arith.constant 2 : index
    %49 = vector.load %arg2[%c0_18, %c2] : memref<4x18xf32, #tpu.memory_space<vmem>>, vector<4x1xf32>
    %50 = vector.broadcast %48 : vector<1x256xf32> to vector<4x256xf32>
    %51 = vector.broadcast %49 : vector<4x1xf32> to vector<4x256xf32>
    %52 = arith.mulf %50, %51 : vector<4x256xf32>
    %53 = arith.addf %45, %52 : vector<4x256xf32>
    %c16_i32_19 = arith.constant 16 : i32
    %54 = tpu.dynamic_rotate %27 by %c16_i32_19 dim 1 : vector<1x256xf32>, i32 -> vector<1x256xf32>
    %cst_20 = arith.constant 0.000000e+00 : f32
    %55 = vector.broadcast %cst_20 : f32 to vector<1x256xf32>
    %56 = arith.select %18, %54, %55 : vector<1x256xi1>, vector<1x256xf32>
    %c0_21 = arith.constant 0 : index
    %c3 = arith.constant 3 : index
    %57 = vector.load %arg2[%c0_21, %c3] : memref<4x18xf32, #tpu.memory_space<vmem>>, vector<4x1xf32>
    %58 = vector.broadcast %56 : vector<1x256xf32> to vector<4x256xf32>
    %59 = vector.broadcast %57 : vector<4x1xf32> to vector<4x256xf32>
    %60 = arith.mulf %58, %59 : vector<4x256xf32>
    %61 = arith.addf %53, %60 : vector<4x256xf32>
    %62 = arith.andi %18, %24 : vector<1x256xi1>
    %c15_i32_22 = arith.constant 15 : i32
    %63 = tpu.dynamic_rotate %26 by %c15_i32_22 dim 1 : vector<1x256xf32>, i32 -> vector<1x256xf32>
    %cst_23 = arith.constant 0.000000e+00 : f32
    %64 = vector.broadcast %cst_23 : f32 to vector<1x256xf32>
    %65 = arith.select %62, %63, %64 : vector<1x256xi1>, vector<1x256xf32>
    %c0_24 = arith.constant 0 : index
    %c4 = arith.constant 4 : index
    %66 = vector.load %arg2[%c0_24, %c4] : memref<4x18xf32, #tpu.memory_space<vmem>>, vector<4x1xf32>
    %67 = vector.broadcast %65 : vector<1x256xf32> to vector<4x256xf32>
    %68 = vector.broadcast %66 : vector<4x1xf32> to vector<4x256xf32>
    %69 = arith.mulf %67, %68 : vector<4x256xf32>
    %70 = arith.addf %61, %69 : vector<4x256xf32>
    %c15_i32_25 = arith.constant 15 : i32
    %71 = tpu.dynamic_rotate %27 by %c15_i32_25 dim 1 : vector<1x256xf32>, i32 -> vector<1x256xf32>
    %cst_26 = arith.constant 0.000000e+00 : f32
    %72 = vector.broadcast %cst_26 : f32 to vector<1x256xf32>
    %73 = arith.select %62, %71, %72 : vector<1x256xi1>, vector<1x256xf32>
    %c0_27 = arith.constant 0 : index
    %c5 = arith.constant 5 : index
    %74 = vector.load %arg2[%c0_27, %c5] : memref<4x18xf32, #tpu.memory_space<vmem>>, vector<4x1xf32>
    %75 = vector.broadcast %73 : vector<1x256xf32> to vector<4x256xf32>
    %76 = vector.broadcast %74 : vector<4x1xf32> to vector<4x256xf32>
    %77 = arith.mulf %75, %76 : vector<4x256xf32>
    %78 = arith.addf %70, %77 : vector<4x256xf32>
    %c1_i32_28 = arith.constant 1 : i32
    %79 = tpu.dynamic_rotate %26 by %c1_i32_28 dim 1 : vector<1x256xf32>, i32 -> vector<1x256xf32>
    %cst_29 = arith.constant 0.000000e+00 : f32
    %80 = vector.broadcast %cst_29 : f32 to vector<1x256xf32>
    %81 = arith.select %22, %79, %80 : vector<1x256xi1>, vector<1x256xf32>
    %c0_30 = arith.constant 0 : index
    %c6 = arith.constant 6 : index
    %82 = vector.load %arg2[%c0_30, %c6] : memref<4x18xf32, #tpu.memory_space<vmem>>, vector<4x1xf32>
    %83 = vector.broadcast %81 : vector<1x256xf32> to vector<4x256xf32>
    %84 = vector.broadcast %82 : vector<4x1xf32> to vector<4x256xf32>
    %85 = arith.mulf %83, %84 : vector<4x256xf32>
    %86 = arith.addf %78, %85 : vector<4x256xf32>
    %c1_i32_31 = arith.constant 1 : i32
    %87 = tpu.dynamic_rotate %27 by %c1_i32_31 dim 1 : vector<1x256xf32>, i32 -> vector<1x256xf32>
    %cst_32 = arith.constant 0.000000e+00 : f32
    %88 = vector.broadcast %cst_32 : f32 to vector<1x256xf32>
    %89 = arith.select %22, %87, %88 : vector<1x256xi1>, vector<1x256xf32>
    %c0_33 = arith.constant 0 : index
    %c7 = arith.constant 7 : index
    %90 = vector.load %arg2[%c0_33, %c7] : memref<4x18xf32, #tpu.memory_space<vmem>>, vector<4x1xf32>
    %91 = vector.broadcast %89 : vector<1x256xf32> to vector<4x256xf32>
    %92 = vector.broadcast %90 : vector<4x1xf32> to vector<4x256xf32>
    %93 = arith.mulf %91, %92 : vector<4x256xf32>
    %94 = arith.addf %86, %93 : vector<4x256xf32>
    %c0_34 = arith.constant 0 : index
    %c8 = arith.constant 8 : index
    %95 = vector.load %arg2[%c0_34, %c8] : memref<4x18xf32, #tpu.memory_space<vmem>>, vector<4x1xf32>
    %96 = vector.broadcast %26 : vector<1x256xf32> to vector<4x256xf32>
    %97 = vector.broadcast %95 : vector<4x1xf32> to vector<4x256xf32>
    %98 = arith.mulf %96, %97 : vector<4x256xf32>
    %99 = arith.addf %94, %98 : vector<4x256xf32>
    %c0_35 = arith.constant 0 : index
    %c9 = arith.constant 9 : index
    %100 = vector.load %arg2[%c0_35, %c9] : memref<4x18xf32, #tpu.memory_space<vmem>>, vector<4x1xf32>
    %101 = vector.broadcast %27 : vector<1x256xf32> to vector<4x256xf32>
    %102 = vector.broadcast %100 : vector<4x1xf32> to vector<4x256xf32>
    %103 = arith.mulf %101, %102 : vector<4x256xf32>
    %104 = arith.addf %99, %103 : vector<4x256xf32>
    %c255_i32 = arith.constant 255 : i32
    %105 = tpu.dynamic_rotate %26 by %c255_i32 dim 1 : vector<1x256xf32>, i32 -> vector<1x256xf32>
    %cst_36 = arith.constant 0.000000e+00 : f32
    %106 = vector.broadcast %cst_36 : f32 to vector<1x256xf32>
    %107 = arith.select %24, %105, %106 : vector<1x256xi1>, vector<1x256xf32>
    %c0_37 = arith.constant 0 : index
    %c10 = arith.constant 10 : index
    %108 = vector.load %arg2[%c0_37, %c10] : memref<4x18xf32, #tpu.memory_space<vmem>>, vector<4x1xf32>
    %109 = vector.broadcast %107 : vector<1x256xf32> to vector<4x256xf32>
    %110 = vector.broadcast %108 : vector<4x1xf32> to vector<4x256xf32>
    %111 = arith.mulf %109, %110 : vector<4x256xf32>
    %112 = arith.addf %104, %111 : vector<4x256xf32>
    %c255_i32_38 = arith.constant 255 : i32
    %113 = tpu.dynamic_rotate %27 by %c255_i32_38 dim 1 : vector<1x256xf32>, i32 -> vector<1x256xf32>
    %cst_39 = arith.constant 0.000000e+00 : f32
    %114 = vector.broadcast %cst_39 : f32 to vector<1x256xf32>
    %115 = arith.select %24, %113, %114 : vector<1x256xi1>, vector<1x256xf32>
    %c0_40 = arith.constant 0 : index
    %c11 = arith.constant 11 : index
    %116 = vector.load %arg2[%c0_40, %c11] : memref<4x18xf32, #tpu.memory_space<vmem>>, vector<4x1xf32>
    %117 = vector.broadcast %115 : vector<1x256xf32> to vector<4x256xf32>
    %118 = vector.broadcast %116 : vector<4x1xf32> to vector<4x256xf32>
    %119 = arith.mulf %117, %118 : vector<4x256xf32>
    %120 = arith.addf %112, %119 : vector<4x256xf32>
    %121 = arith.andi %20, %22 : vector<1x256xi1>
    %c241_i32 = arith.constant 241 : i32
    %122 = tpu.dynamic_rotate %26 by %c241_i32 dim 1 : vector<1x256xf32>, i32 -> vector<1x256xf32>
    %cst_41 = arith.constant 0.000000e+00 : f32
    %123 = vector.broadcast %cst_41 : f32 to vector<1x256xf32>
    %124 = arith.select %121, %122, %123 : vector<1x256xi1>, vector<1x256xf32>
    %c0_42 = arith.constant 0 : index
    %c12 = arith.constant 12 : index
    %125 = vector.load %arg2[%c0_42, %c12] : memref<4x18xf32, #tpu.memory_space<vmem>>, vector<4x1xf32>
    %126 = vector.broadcast %124 : vector<1x256xf32> to vector<4x256xf32>
    %127 = vector.broadcast %125 : vector<4x1xf32> to vector<4x256xf32>
    %128 = arith.mulf %126, %127 : vector<4x256xf32>
    %129 = arith.addf %120, %128 : vector<4x256xf32>
    %c241_i32_43 = arith.constant 241 : i32
    %130 = tpu.dynamic_rotate %27 by %c241_i32_43 dim 1 : vector<1x256xf32>, i32 -> vector<1x256xf32>
    %cst_44 = arith.constant 0.000000e+00 : f32
    %131 = vector.broadcast %cst_44 : f32 to vector<1x256xf32>
    %132 = arith.select %121, %130, %131 : vector<1x256xi1>, vector<1x256xf32>
    %c0_45 = arith.constant 0 : index
    %c13 = arith.constant 13 : index
    %133 = vector.load %arg2[%c0_45, %c13] : memref<4x18xf32, #tpu.memory_space<vmem>>, vector<4x1xf32>
    %134 = vector.broadcast %132 : vector<1x256xf32> to vector<4x256xf32>
    %135 = vector.broadcast %133 : vector<4x1xf32> to vector<4x256xf32>
    %136 = arith.mulf %134, %135 : vector<4x256xf32>
    %137 = arith.addf %129, %136 : vector<4x256xf32>
    %c240_i32_46 = arith.constant 240 : i32
    %138 = tpu.dynamic_rotate %26 by %c240_i32_46 dim 1 : vector<1x256xf32>, i32 -> vector<1x256xf32>
    %cst_47 = arith.constant 0.000000e+00 : f32
    %139 = vector.broadcast %cst_47 : f32 to vector<1x256xf32>
    %140 = arith.select %20, %138, %139 : vector<1x256xi1>, vector<1x256xf32>
    %c0_48 = arith.constant 0 : index
    %c14 = arith.constant 14 : index
    %141 = vector.load %arg2[%c0_48, %c14] : memref<4x18xf32, #tpu.memory_space<vmem>>, vector<4x1xf32>
    %142 = vector.broadcast %140 : vector<1x256xf32> to vector<4x256xf32>
    %143 = vector.broadcast %141 : vector<4x1xf32> to vector<4x256xf32>
    %144 = arith.mulf %142, %143 : vector<4x256xf32>
    %145 = arith.addf %137, %144 : vector<4x256xf32>
    %c240_i32_49 = arith.constant 240 : i32
    %146 = tpu.dynamic_rotate %27 by %c240_i32_49 dim 1 : vector<1x256xf32>, i32 -> vector<1x256xf32>
    %cst_50 = arith.constant 0.000000e+00 : f32
    %147 = vector.broadcast %cst_50 : f32 to vector<1x256xf32>
    %148 = arith.select %20, %146, %147 : vector<1x256xi1>, vector<1x256xf32>
    %c0_51 = arith.constant 0 : index
    %c15 = arith.constant 15 : index
    %149 = vector.load %arg2[%c0_51, %c15] : memref<4x18xf32, #tpu.memory_space<vmem>>, vector<4x1xf32>
    %150 = vector.broadcast %148 : vector<1x256xf32> to vector<4x256xf32>
    %151 = vector.broadcast %149 : vector<4x1xf32> to vector<4x256xf32>
    %152 = arith.mulf %150, %151 : vector<4x256xf32>
    %153 = arith.addf %145, %152 : vector<4x256xf32>
    %154 = arith.andi %20, %24 : vector<1x256xi1>
    %c239_i32 = arith.constant 239 : i32
    %155 = tpu.dynamic_rotate %26 by %c239_i32 dim 1 : vector<1x256xf32>, i32 -> vector<1x256xf32>
    %cst_52 = arith.constant 0.000000e+00 : f32
    %156 = vector.broadcast %cst_52 : f32 to vector<1x256xf32>
    %157 = arith.select %154, %155, %156 : vector<1x256xi1>, vector<1x256xf32>
    %c0_53 = arith.constant 0 : index
    %c16 = arith.constant 16 : index
    %158 = vector.load %arg2[%c0_53, %c16] : memref<4x18xf32, #tpu.memory_space<vmem>>, vector<4x1xf32>
    %159 = vector.broadcast %157 : vector<1x256xf32> to vector<4x256xf32>
    %160 = vector.broadcast %158 : vector<4x1xf32> to vector<4x256xf32>
    %161 = arith.mulf %159, %160 : vector<4x256xf32>
    %162 = arith.addf %153, %161 : vector<4x256xf32>
    %c239_i32_54 = arith.constant 239 : i32
    %163 = tpu.dynamic_rotate %27 by %c239_i32_54 dim 1 : vector<1x256xf32>, i32 -> vector<1x256xf32>
    %cst_55 = arith.constant 0.000000e+00 : f32
    %164 = vector.broadcast %cst_55 : f32 to vector<1x256xf32>
    %165 = arith.select %154, %163, %164 : vector<1x256xi1>, vector<1x256xf32>
    %c0_56 = arith.constant 0 : index
    %c17 = arith.constant 17 : index
    %166 = vector.load %arg2[%c0_56, %c17] : memref<4x18xf32, #tpu.memory_space<vmem>>, vector<4x1xf32>
    %167 = vector.broadcast %165 : vector<1x256xf32> to vector<4x256xf32>
    %168 = vector.broadcast %166 : vector<4x1xf32> to vector<4x256xf32>
    %169 = arith.mulf %167, %168 : vector<4x256xf32>
    %170 = arith.addf %162, %169 : vector<4x256xf32>
    %171 = vector.broadcast %25 : vector<4x1xf32> to vector<4x256xf32>
    %172 = arith.addf %170, %171 : vector<4x256xf32>
    %cst_57 = arith.constant 0.000000e+00 : f32
    %173 = vector.broadcast %cst_57 : f32 to vector<4x256xf32>
    %174 = arith.maximumf %172, %173 : vector<4x256xf32>
    %c0_58 = arith.constant 0 : index
    %c0_59 = arith.constant 0 : index
    %c0_60 = arith.constant 0 : index
    %175 = vector.load %arg4[%c0_58, %c0_59, %c0_60] : memref<2x4x256xf32, #tpu.memory_space<vmem>>, vector<1x4x256xf32>
    %176 = vector.shape_cast %175 : vector<1x4x256xf32> to vector<4x256xf32>
    %177 = vector.shape_cast %174 : vector<4x256xf32> to vector<1x4x256xf32>
    tpu.vector_store %arg4[%c0_58, %c0_59, %c0_60], %177 {strides = array<i32>} : memref<2x4x256xf32, #tpu.memory_space<vmem>>, vector<1x4x256xf32>,
    %c1_61 = arith.constant 1 : index
    %c0_62 = arith.constant 0 : index
    %178 = vector.load %arg0[%c1_61, %c0_62] : memref<2x256xf32, #tpu.memory_space<vmem>>, vector<1x256xf32>
    %c1_63 = arith.constant 1 : index
    %c0_64 = arith.constant 0 : index
    %179 = vector.load %arg1[%c1_63, %c0_64] : memref<2x256xf32, #tpu.memory_space<vmem>>, vector<1x256xf32>
    %cst_65 = arith.constant 0.000000e+00 : f32
    %180 = vector.broadcast %cst_65 : f32 to vector<4x256xf32>
    %181 = arith.andi %18, %22 : vector<1x256xi1>
    %c17_i32_66 = arith.constant 17 : i32
    %182 = tpu.dynamic_rotate %178 by %c17_i32_66 dim 1 : vector<1x256xf32>, i32 -> vector<1x256xf32>
    %cst_67 = arith.constant 0.000000e+00 : f32
    %183 = vector.broadcast %cst_67 : f32 to vector<1x256xf32>
    %184 = arith.select %181, %182, %183 : vector<1x256xi1>, vector<1x256xf32>
    %c0_68 = arith.constant 0 : index
    %c0_69 = arith.constant 0 : index
    %185 = vector.load %arg2[%c0_68, %c0_69] : memref<4x18xf32, #tpu.memory_space<vmem>>, vector<4x1xf32>
    %186 = vector.broadcast %184 : vector<1x256xf32> to vector<4x256xf32>
    %187 = vector.broadcast %185 : vector<4x1xf32> to vector<4x256xf32>
    %188 = arith.mulf %186, %187 : vector<4x256xf32>
    %189 = arith.addf %180, %188 : vector<4x256xf32>
    %c17_i32_70 = arith.constant 17 : i32
    %190 = tpu.dynamic_rotate %179 by %c17_i32_70 dim 1 : vector<1x256xf32>, i32 -> vector<1x256xf32>
    %cst_71 = arith.constant 0.000000e+00 : f32
    %191 = vector.broadcast %cst_71 : f32 to vector<1x256xf32>
    %192 = arith.select %181, %190, %191 : vector<1x256xi1>, vector<1x256xf32>
    %c0_72 = arith.constant 0 : index
    %c1_73 = arith.constant 1 : index
    %193 = vector.load %arg2[%c0_72, %c1_73] : memref<4x18xf32, #tpu.memory_space<vmem>>, vector<4x1xf32>
    %194 = vector.broadcast %192 : vector<1x256xf32> to vector<4x256xf32>
    %195 = vector.broadcast %193 : vector<4x1xf32> to vector<4x256xf32>
    %196 = arith.mulf %194, %195 : vector<4x256xf32>
    %197 = arith.addf %189, %196 : vector<4x256xf32>
    %c16_i32_74 = arith.constant 16 : i32
    %198 = tpu.dynamic_rotate %178 by %c16_i32_74 dim 1 : vector<1x256xf32>, i32 -> vector<1x256xf32>
    %cst_75 = arith.constant 0.000000e+00 : f32
    %199 = vector.broadcast %cst_75 : f32 to vector<1x256xf32>
    %200 = arith.select %18, %198, %199 : vector<1x256xi1>, vector<1x256xf32>
    %c0_76 = arith.constant 0 : index
    %c2_77 = arith.constant 2 : index
    %201 = vector.load %arg2[%c0_76, %c2_77] : memref<4x18xf32, #tpu.memory_space<vmem>>, vector<4x1xf32>
    %202 = vector.broadcast %200 : vector<1x256xf32> to vector<4x256xf32>
    %203 = vector.broadcast %201 : vector<4x1xf32> to vector<4x256xf32>
    %204 = arith.mulf %202, %203 : vector<4x256xf32>
    %205 = arith.addf %197, %204 : vector<4x256xf32>
    %c16_i32_78 = arith.constant 16 : i32
    %206 = tpu.dynamic_rotate %179 by %c16_i32_78 dim 1 : vector<1x256xf32>, i32 -> vector<1x256xf32>
    %cst_79 = arith.constant 0.000000e+00 : f32
    %207 = vector.broadcast %cst_79 : f32 to vector<1x256xf32>
    %208 = arith.select %18, %206, %207 : vector<1x256xi1>, vector<1x256xf32>
    %c0_80 = arith.constant 0 : index
    %c3_81 = arith.constant 3 : index
    %209 = vector.load %arg2[%c0_80, %c3_81] : memref<4x18xf32, #tpu.memory_space<vmem>>, vector<4x1xf32>
    %210 = vector.broadcast %208 : vector<1x256xf32> to vector<4x256xf32>
    %211 = vector.broadcast %209 : vector<4x1xf32> to vector<4x256xf32>
    %212 = arith.mulf %210, %211 : vector<4x256xf32>
    %213 = arith.addf %205, %212 : vector<4x256xf32>
    %214 = arith.andi %18, %24 : vector<1x256xi1>
    %c15_i32_82 = arith.constant 15 : i32
    %215 = tpu.dynamic_rotate %178 by %c15_i32_82 dim 1 : vector<1x256xf32>, i32 -> vector<1x256xf32>
    %cst_83 = arith.constant 0.000000e+00 : f32
    %216 = vector.broadcast %cst_83 : f32 to vector<1x256xf32>
    %217 = arith.select %214, %215, %216 : vector<1x256xi1>, vector<1x256xf32>
    %c0_84 = arith.constant 0 : index
    %c4_85 = arith.constant 4 : index
    %218 = vector.load %arg2[%c0_84, %c4_85] : memref<4x18xf32, #tpu.memory_space<vmem>>, vector<4x1xf32>
    %219 = vector.broadcast %217 : vector<1x256xf32> to vector<4x256xf32>
    %220 = vector.broadcast %218 : vector<4x1xf32> to vector<4x256xf32>
    %221 = arith.mulf %219, %220 : vector<4x256xf32>
    %222 = arith.addf %213, %221 : vector<4x256xf32>
    %c15_i32_86 = arith.constant 15 : i32
    %223 = tpu.dynamic_rotate %179 by %c15_i32_86 dim 1 : vector<1x256xf32>, i32 -> vector<1x256xf32>
    %cst_87 = arith.constant 0.000000e+00 : f32
    %224 = vector.broadcast %cst_87 : f32 to vector<1x256xf32>
    %225 = arith.select %214, %223, %224 : vector<1x256xi1>, vector<1x256xf32>
    %c0_88 = arith.constant 0 : index
    %c5_89 = arith.constant 5 : index
    %226 = vector.load %arg2[%c0_88, %c5_89] : memref<4x18xf32, #tpu.memory_space<vmem>>, vector<4x1xf32>
    %227 = vector.broadcast %225 : vector<1x256xf32> to vector<4x256xf32>
    %228 = vector.broadcast %226 : vector<4x1xf32> to vector<4x256xf32>
    %229 = arith.mulf %227, %228 : vector<4x256xf32>
    %230 = arith.addf %222, %229 : vector<4x256xf32>
    %c1_i32_90 = arith.constant 1 : i32
    %231 = tpu.dynamic_rotate %178 by %c1_i32_90 dim 1 : vector<1x256xf32>, i32 -> vector<1x256xf32>
    %cst_91 = arith.constant 0.000000e+00 : f32
    %232 = vector.broadcast %cst_91 : f32 to vector<1x256xf32>
    %233 = arith.select %22, %231, %232 : vector<1x256xi1>, vector<1x256xf32>
    %c0_92 = arith.constant 0 : index
    %c6_93 = arith.constant 6 : index
    %234 = vector.load %arg2[%c0_92, %c6_93] : memref<4x18xf32, #tpu.memory_space<vmem>>, vector<4x1xf32>
    %235 = vector.broadcast %233 : vector<1x256xf32> to vector<4x256xf32>
    %236 = vector.broadcast %234 : vector<4x1xf32> to vector<4x256xf32>
    %237 = arith.mulf %235, %236 : vector<4x256xf32>
    %238 = arith.addf %230, %237 : vector<4x256xf32>
    %c1_i32_94 = arith.constant 1 : i32
    %239 = tpu.dynamic_rotate %179 by %c1_i32_94 dim 1 : vector<1x256xf32>, i32 -> vector<1x256xf32>
    %cst_95 = arith.constant 0.000000e+00 : f32
    %240 = vector.broadcast %cst_95 : f32 to vector<1x256xf32>
    %241 = arith.select %22, %239, %240 : vector<1x256xi1>, vector<1x256xf32>
    %c0_96 = arith.constant 0 : index
    %c7_97 = arith.constant 7 : index
    %242 = vector.load %arg2[%c0_96, %c7_97] : memref<4x18xf32, #tpu.memory_space<vmem>>, vector<4x1xf32>
    %243 = vector.broadcast %241 : vector<1x256xf32> to vector<4x256xf32>
    %244 = vector.broadcast %242 : vector<4x1xf32> to vector<4x256xf32>
    %245 = arith.mulf %243, %244 : vector<4x256xf32>
    %246 = arith.addf %238, %245 : vector<4x256xf32>
    %c0_98 = arith.constant 0 : index
    %c8_99 = arith.constant 8 : index
    %247 = vector.load %arg2[%c0_98, %c8_99] : memref<4x18xf32, #tpu.memory_space<vmem>>, vector<4x1xf32>
    %248 = vector.broadcast %178 : vector<1x256xf32> to vector<4x256xf32>
    %249 = vector.broadcast %247 : vector<4x1xf32> to vector<4x256xf32>
    %250 = arith.mulf %248, %249 : vector<4x256xf32>
    %251 = arith.addf %246, %250 : vector<4x256xf32>
    %c0_100 = arith.constant 0 : index
    %c9_101 = arith.constant 9 : index
    %252 = vector.load %arg2[%c0_100, %c9_101] : memref<4x18xf32, #tpu.memory_space<vmem>>, vector<4x1xf32>
    %253 = vector.broadcast %179 : vector<1x256xf32> to vector<4x256xf32>
    %254 = vector.broadcast %252 : vector<4x1xf32> to vector<4x256xf32>
    %255 = arith.mulf %253, %254 : vector<4x256xf32>
    %256 = arith.addf %251, %255 : vector<4x256xf32>
    %c255_i32_102 = arith.constant 255 : i32
    %257 = tpu.dynamic_rotate %178 by %c255_i32_102 dim 1 : vector<1x256xf32>, i32 -> vector<1x256xf32>
    %cst_103 = arith.constant 0.000000e+00 : f32
    %258 = vector.broadcast %cst_103 : f32 to vector<1x256xf32>
    %259 = arith.select %24, %257, %258 : vector<1x256xi1>, vector<1x256xf32>
    %c0_104 = arith.constant 0 : index
    %c10_105 = arith.constant 10 : index
    %260 = vector.load %arg2[%c0_104, %c10_105] : memref<4x18xf32, #tpu.memory_space<vmem>>, vector<4x1xf32>
    %261 = vector.broadcast %259 : vector<1x256xf32> to vector<4x256xf32>
    %262 = vector.broadcast %260 : vector<4x1xf32> to vector<4x256xf32>
    %263 = arith.mulf %261, %262 : vector<4x256xf32>
    %264 = arith.addf %256, %263 : vector<4x256xf32>
    %c255_i32_106 = arith.constant 255 : i32
    %265 = tpu.dynamic_rotate %179 by %c255_i32_106 dim 1 : vector<1x256xf32>, i32 -> vector<1x256xf32>
    %cst_107 = arith.constant 0.000000e+00 : f32
    %266 = vector.broadcast %cst_107 : f32 to vector<1x256xf32>
    %267 = arith.select %24, %265, %266 : vector<1x256xi1>, vector<1x256xf32>
    %c0_108 = arith.constant 0 : index
    %c11_109 = arith.constant 11 : index
    %268 = vector.load %arg2[%c0_108, %c11_109] : memref<4x18xf32, #tpu.memory_space<vmem>>, vector<4x1xf32>
    %269 = vector.broadcast %267 : vector<1x256xf32> to vector<4x256xf32>
    %270 = vector.broadcast %268 : vector<4x1xf32> to vector<4x256xf32>
    %271 = arith.mulf %269, %270 : vector<4x256xf32>
    %272 = arith.addf %264, %271 : vector<4x256xf32>
    %273 = arith.andi %20, %22 : vector<1x256xi1>
    %c241_i32_110 = arith.constant 241 : i32
    %274 = tpu.dynamic_rotate %178 by %c241_i32_110 dim 1 : vector<1x256xf32>, i32 -> vector<1x256xf32>
    %cst_111 = arith.constant 0.000000e+00 : f32
    %275 = vector.broadcast %cst_111 : f32 to vector<1x256xf32>
    %276 = arith.select %273, %274, %275 : vector<1x256xi1>, vector<1x256xf32>
    %c0_112 = arith.constant 0 : index
    %c12_113 = arith.constant 12 : index
    %277 = vector.load %arg2[%c0_112, %c12_113] : memref<4x18xf32, #tpu.memory_space<vmem>>, vector<4x1xf32>
    %278 = vector.broadcast %276 : vector<1x256xf32> to vector<4x256xf32>
    %279 = vector.broadcast %277 : vector<4x1xf32> to vector<4x256xf32>
    %280 = arith.mulf %278, %279 : vector<4x256xf32>
    %281 = arith.addf %272, %280 : vector<4x256xf32>
    %c241_i32_114 = arith.constant 241 : i32
    %282 = tpu.dynamic_rotate %179 by %c241_i32_114 dim 1 : vector<1x256xf32>, i32 -> vector<1x256xf32>
    %cst_115 = arith.constant 0.000000e+00 : f32
    %283 = vector.broadcast %cst_115 : f32 to vector<1x256xf32>
    %284 = arith.select %273, %282, %283 : vector<1x256xi1>, vector<1x256xf32>
    %c0_116 = arith.constant 0 : index
    %c13_117 = arith.constant 13 : index
    %285 = vector.load %arg2[%c0_116, %c13_117] : memref<4x18xf32, #tpu.memory_space<vmem>>, vector<4x1xf32>
    %286 = vector.broadcast %284 : vector<1x256xf32> to vector<4x256xf32>
    %287 = vector.broadcast %285 : vector<4x1xf32> to vector<4x256xf32>
    %288 = arith.mulf %286, %287 : vector<4x256xf32>
    %289 = arith.addf %281, %288 : vector<4x256xf32>
    %c240_i32_118 = arith.constant 240 : i32
    %290 = tpu.dynamic_rotate %178 by %c240_i32_118 dim 1 : vector<1x256xf32>, i32 -> vector<1x256xf32>
    %cst_119 = arith.constant 0.000000e+00 : f32
    %291 = vector.broadcast %cst_119 : f32 to vector<1x256xf32>
    %292 = arith.select %20, %290, %291 : vector<1x256xi1>, vector<1x256xf32>
    %c0_120 = arith.constant 0 : index
    %c14_121 = arith.constant 14 : index
    %293 = vector.load %arg2[%c0_120, %c14_121] : memref<4x18xf32, #tpu.memory_space<vmem>>, vector<4x1xf32>
    %294 = vector.broadcast %292 : vector<1x256xf32> to vector<4x256xf32>
    %295 = vector.broadcast %293 : vector<4x1xf32> to vector<4x256xf32>
    %296 = arith.mulf %294, %295 : vector<4x256xf32>
    %297 = arith.addf %289, %296 : vector<4x256xf32>
    %c240_i32_122 = arith.constant 240 : i32
    %298 = tpu.dynamic_rotate %179 by %c240_i32_122 dim 1 : vector<1x256xf32>, i32 -> vector<1x256xf32>
    %cst_123 = arith.constant 0.000000e+00 : f32
    %299 = vector.broadcast %cst_123 : f32 to vector<1x256xf32>
    %300 = arith.select %20, %298, %299 : vector<1x256xi1>, vector<1x256xf32>
    %c0_124 = arith.constant 0 : index
    %c15_125 = arith.constant 15 : index
    %301 = vector.load %arg2[%c0_124, %c15_125] : memref<4x18xf32, #tpu.memory_space<vmem>>, vector<4x1xf32>
    %302 = vector.broadcast %300 : vector<1x256xf32> to vector<4x256xf32>
    %303 = vector.broadcast %301 : vector<4x1xf32> to vector<4x256xf32>
    %304 = arith.mulf %302, %303 : vector<4x256xf32>
    %305 = arith.addf %297, %304 : vector<4x256xf32>
    %306 = arith.andi %20, %24 : vector<1x256xi1>
    %c239_i32_126 = arith.constant 239 : i32
    %307 = tpu.dynamic_rotate %178 by %c239_i32_126 dim 1 : vector<1x256xf32>, i32 -> vector<1x256xf32>
    %cst_127 = arith.constant 0.000000e+00 : f32
    %308 = vector.broadcast %cst_127 : f32 to vector<1x256xf32>
    %309 = arith.select %306, %307, %308 : vector<1x256xi1>, vector<1x256xf32>
    %c0_128 = arith.constant 0 : index
    %c16_129 = arith.constant 16 : index
    %310 = vector.load %arg2[%c0_128, %c16_129] : memref<4x18xf32, #tpu.memory_space<vmem>>, vector<4x1xf32>
    %311 = vector.broadcast %309 : vector<1x256xf32> to vector<4x256xf32>
    %312 = vector.broadcast %310 : vector<4x1xf32> to vector<4x256xf32>
    %313 = arith.mulf %311, %312 : vector<4x256xf32>
    %314 = arith.addf %305, %313 : vector<4x256xf32>
    %c239_i32_130 = arith.constant 239 : i32
    %315 = tpu.dynamic_rotate %179 by %c239_i32_130 dim 1 : vector<1x256xf32>, i32 -> vector<1x256xf32>
    %cst_131 = arith.constant 0.000000e+00 : f32
    %316 = vector.broadcast %cst_131 : f32 to vector<1x256xf32>
    %317 = arith.select %306, %315, %316 : vector<1x256xi1>, vector<1x256xf32>
    %c0_132 = arith.constant 0 : index
    %c17_133 = arith.constant 17 : index
    %318 = vector.load %arg2[%c0_132, %c17_133] : memref<4x18xf32, #tpu.memory_space<vmem>>, vector<4x1xf32>
    %319 = vector.broadcast %317 : vector<1x256xf32> to vector<4x256xf32>
    %320 = vector.broadcast %318 : vector<4x1xf32> to vector<4x256xf32>
    %321 = arith.mulf %319, %320 : vector<4x256xf32>
    %322 = arith.addf %314, %321 : vector<4x256xf32>
    %323 = vector.broadcast %25 : vector<4x1xf32> to vector<4x256xf32>
    %324 = arith.addf %322, %323 : vector<4x256xf32>
    %cst_134 = arith.constant 0.000000e+00 : f32
    %325 = vector.broadcast %cst_134 : f32 to vector<4x256xf32>
    %326 = arith.maximumf %324, %325 : vector<4x256xf32>
    %c1_135 = arith.constant 1 : index
    %c0_136 = arith.constant 0 : index
    %c0_137 = arith.constant 0 : index
    %327 = vector.load %arg4[%c1_135, %c0_136, %c0_137] : memref<2x4x256xf32, #tpu.memory_space<vmem>>, vector<1x4x256xf32>
    %328 = vector.shape_cast %327 : vector<1x4x256xf32> to vector<4x256xf32>
    %329 = vector.shape_cast %326 : vector<4x256xf32> to vector<1x4x256xf32>
    tpu.vector_store %arg4[%c1_135, %c0_136, %c0_137], %329 {strides = array<i32>} : memref<2x4x256xf32, #tpu.memory_space<vmem>>, vector<1x4x256xf32>,
    return
  }
}

</mosaic_0001>

<bundles_post_ra>
// kernel: conv3x3_relu_pallas.1
= control target key start
LH: loop header
LB: loop body
LE: loop exit
PB: predicated region body
PF: predicated region fallthrough
CT: control target
= control target key end

     0   :  { %v17_v0 = vlaneseq  ;;  %v1006_v1 = vmov 0   ;;  %v1007_v3 = vmov 5   ;;  %v1008_v9 = vmov 1   ;;  %s1009_s21 = smov 17   ;;  %s1011_s24 = smov 16   ;;  %s1827_s2 = inlined_call_operand.vmem [shape: f32[4,18], index: 2, kind: input, shape index: {}]   ;;  %s1828_s0 = inlined_call_operand.vmem [shape: f32[2,256], index: 0, kind: input, shape index: {}]   ;;  %s1829_s1 = inlined_call_operand.vmem [shape: f32[2,256], index: 1, kind: input, shape index: {}]   ;;  %s1830_s3 = inlined_call_operand.vmem [shape: f32[4,1], index: 3, kind: input, shape index: {}]   ;;  %s1831_s4 = inlined_call_operand.vmem [shape: f32[2,4,256], index: 4, kind: output, shape index: {}]  }
   0x1   :  { %980 = vset.pattern.permute.xlu1 %v1006_v1  ;;  %v1061_v2 = vld [vmem:[%s1827_s2] sm:$0xf]  ;;  %982 = vset.pattern.permute.xlu0 %v1007_v3  ;;  %v1010_v16 = vmov 8   ;;  %v1013_v17 = vmov 6   ;;  %s1014_s25 = smov 127   ;;  %v1015_v18 = vmov 10  }
   0x2   :  { %88 = vperm.xlu1 %980, %v1061_v2   ;;  %v59_v4 = vshrl.u32 %v17_v0, 7  ;;  %v53_v5 = vld [vmem:[%s1828_s0] ss:$2 sm:$0x3]  ;;  %v1016_v20 = vmov 11   ;;  %s1017_s28 = smov 1  }
   0x3   :  { %v54_v7 = vld [vmem:[%s1829_s1] ss:$2 sm:$0x3]  ;;  %v952_v13 = vld [vmem:[%s1829_s1 + $0x1] ss:$2 sm:$0x3] }
   0x4   :  { %v1069_v6 = vsub.s32 0, %v59_v4  ;;  %v64_v8 = vsub.s32 1, %v59_v4  ;;  %s1012_s1 = smov 15   ;;  %v951_v19 = vld [vmem:[%s1828_s0 + $0x1] ss:$2 sm:$0x3] }
   0x5   :  { %v1145_v23 = vld [vmem:[%s1827_s2] sm:$0xf]  ;;  %v1018_v24 = vmov 2   ;;  %v1019_v25 = vmov 9   ;;  %v1020_v26 = vmov 3   ;;  %v1021_v27 = vmov 4  }
   0x6   :  { %981 = vset.pattern.permute.xlu1 %v1008_v9  ;;  %v1075_v10 = vrot.slane %v53_v5, %v1069_v6  ;;  %v1079_v11 = vrot.slane %v54_v7, %v1069_v6  ;;  %v1083_v12 = vrot.slane %v53_v5, %v64_v8  ;;  %v1090_v14 = vrot.slane %v952_v13, %v64_v8  ;;  %s1022_s2 = smov 113   ;;  %s1024_s30 = smov 112   ;;  %v52_v35 = vld [vmem:[%s1830_s3] sm:$0xf] }
   0x7   :  { %123 = vperm.xlu1 %981, %v1061_v2   ;;  %v1094_v15 = vrot.slane %v54_v7, %v64_v8  ;;  %v1127_v21 = vrot.slane %v951_v19, %v64_v8  ;;  %v1134_v22 = vrot.slane %v952_v13, %v1069_v6  ;;  %v1023_v28 = vmov 7   ;;  %s1026_s5 = smov 111  }
   0x8   :  { %68 = vrot.lane.b32.xlu0 %v1075_v10, %s1009_s21  ;;  %v1025_v29 = vmov 12   ;;  %v1190_v30 = vrot.slane %v951_v19, %v1069_v6  ;;  %v1027_v31 = vmov 13   ;;  %v1202_v32 = vand.u32 127, %v17_v0 }
   0x9   :  { %v1028_v43 = vmov 14   ;;  %v1029_v55 = vmov 15   ;;  %v1030_v8 = vmov 16   ;;  %v1031_v19 = vmov 17  }
   0xa   :  { %vm72_vm0 = vcmp.lt.s32.totalorder %v1202_v32, 17  ;;  %v1209_v34 = vadd.s32 128, %v1202_v32  ;;  %v24_v36 = vand.u32 15, %v1202_v32  ;;  %vm44_vm1 = vcmp.ge.s32.totalorder %v1202_v32, 16 }
   0xb   :  { %106 = vrot.lane.b32.xlu1 %v1079_v11, %s1009_s21  ;;  %vm134_vm5 = vcmp.lt.s32.totalorder %v1202_v32, 16  ;;  %vm185_vm7 = vcmp.lt.s32.totalorder %v1202_v32, 15  ;;  %vm234_vm8 = vcmp.lt.s32.totalorder %v1202_v32, 1  ;;  %vm1832_vm9 = vcmp.lt.s32.totalorder %v1202_v32, 127 }
   0xc   :  { %70 = vrot.lane.b32.xlu0 %v1083_v12, %s1009_s21  ;;  %984 = vset.pattern.permute.xlu1 %v1010_v16  ;;  %v31_v40 = vand.u32 15, %v1209_v34  ;;  %vm1224_vm2 = vcmp.ne.s32.totalorder %v24_v36, 0  ;;  %vm1335_vm6 = vcmp.ne.s32.totalorder %v24_v36, 15  ;;  %vm350_vm12 = vcmp.lt.s32.totalorder %v1202_v32, 113 }
   0xd   :  { %vm1241_vm4 = vmand %vm44_vm1, %vm1224_vm2  ;;  %vm47_vm13 = vcmp.lt.s32.totalorder %v1209_v34, 240  ;;  %vm399_vm15 = vcmp.lt.s32.totalorder %v1202_v32, 112 }
   0xe   :  { %vm1233_vm3 = vcmp.ne.s32.totalorder %v31_v40, 0  ;;  %vm1350_vm10 = vcmp.ne.s32.totalorder %v31_v40, 15  ;;  %vm1358_vm11 = vmand %vm44_vm1, %vm1335_vm6 }
   0xf   :  { %132 = vrot.lane.b32.xlu1 %v1083_v12, %s1011_s24  ;;  %vm1545_vm14 = vmand %vm47_vm13, %vm1233_vm3 }
  0x10   :  { %108 = vrot.lane.b32.xlu0 %v1094_v15, %s1009_s21 }
  0x13   :  { %155 = vrot.lane.b32.xlu1 %v1079_v11, %s1011_s24 }
  0x14   :  { %130 = vrot.lane.b32.xlu0 %v1075_v10, %s1011_s24 }
  0x17   :  { %157 = vrot.lane.b32.xlu1 %v1094_v15, %s1011_s24 }
  0x18   :  { %223 = vperm.xlu0 %982, %v1061_v2  }
  0x1b   :  { %181 = vrot.lane.b32.xlu1 %v1075_v10, %s1012_s1 }
  0x1c   :  { %983 = vset.pattern.permute.xlu0 %v1013_v17 }
  0x1d   :  { %248 = vperm.xlu0 %983, %v1061_v2  }
  0x1f   :  { %183 = vrot.lane.b32.xlu1 %v1083_v12, %s1012_s1 }
  0x21   :  { %295 = vrot.lane.b32.xlu0 %v1075_v10, %s1014_s25 }
  0x22   :  { %986 = vset.pattern.permute.xlu0 %v1015_v18 }
  0x23   :  { %206 = vrot.lane.b32.xlu1 %v1079_v11, %s1012_s1 }
  0x25   :  { %313 = vperm.xlu0 %986, %v1061_v2  }
  0x27   :  { %208 = vrot.lane.b32.xlu1 %v1094_v15, %s1012_s1 }
  0x29   :  { %987 = vset.pattern.permute.xlu0 %v1016_v20 }
  0x2a   :  { %337 = vperm.xlu0 %987, %v1061_v2  }
  0x2b   :  { %230 = vrot.lane.b32.xlu1 %v1075_v10, %s1017_s28 }
  0x2e   :  { %526 = vrot.lane.b32.xlu0 %v1127_v21, %s1009_s21 }
  0x2f   :  { %232 = vrot.lane.b32.xlu1 %v1083_v12, %s1017_s28  ;;  %989 = vset.pattern.permute.xlu0 %v1008_v9 }
  0x32   :  { %561 = vrot.lane.b32.xlu0 %v1134_v22, %s1009_s21 }
  0x33   :  { %255 = vrot.lane.b32.xlu1 %v1079_v11, %s1017_s28 }
  0x36   :  { %578 = vperm.xlu0 %989, %v1145_v23  }
  0x37   :  { %257 = vrot.lane.b32.xlu1 %v1094_v15, %s1017_s28 }
  0x3a   :  { %990 = vset.pattern.permute.xlu0 %v1018_v24 }
  0x3b   :  { %280 = vperm.xlu1 %984, %v1061_v2   ;;  %148 = vperm.xlu0 %990, %v1061_v2  }
  0x3f   :  { %985 = vset.pattern.permute.xlu1 %v1019_v25  ;;  %602 = vperm.xlu0 %990, %v1145_v23  }
  0x40   :  { %288 = vperm.xlu1 %985, %v1061_v2  }
  0x43   :  { %991 = vset.pattern.permute.xlu0 %v1020_v26 }
  0x44   :  { %297 = vrot.lane.b32.xlu1 %v1083_v12, %s1014_s25  ;;  %172 = vperm.xlu0 %991, %v1061_v2  }
  0x45   :  { %988 = vset.pattern.permute.xlu1 %v1006_v1 }
  0x48   :  { %320 = vrot.lane.b32.xlu1 %v1079_v11, %s1014_s25  ;;  %626 = vperm.xlu0 %991, %v1145_v23  }
  0x4c   :  { %322 = vrot.lane.b32.xlu1 %v1094_v15, %s1014_s25  ;;  %992 = vset.pattern.permute.xlu0 %v1021_v27 }
  0x4d   :  { %199 = vperm.xlu0 %992, %v1061_v2  }
  0x50   :  { %346 = vrot.lane.b32.xlu1 %v1075_v10, %s1022_s2 }
  0x51   :  { %650 = vperm.xlu0 %992, %v1145_v23  }
  0x54   :  { %348 = vrot.lane.b32.xlu1 %v1083_v12, %s1022_s2 }
  0x55   :  { %993 = vset.pattern.permute.xlu0 %v1023_v28 }
  0x56   :  { %272 = vperm.xlu0 %993, %v1061_v2  }
  0x58   :  { %371 = vrot.lane.b32.xlu1 %v1079_v11, %s1022_s2 }
  0x5a   :  { %657 = vrot.lane.b32.xlu0 %v1134_v22, %s1012_s1 }
  0x5c   :  { %373 = vrot.lane.b32.xlu1 %v1094_v15, %s1022_s2 }
  0x5e   :  { %722 = vperm.xlu0 %993, %v1145_v23  }
  0x60   :  { %395 = vrot.lane.b32.xlu1 %v1075_v10, %s1024_s30 }
  0x62   :  { %996 = vset.pattern.permute.xlu0 %v1010_v16 }
  0x63   :  { %730 = vperm.xlu0 %996, %v1145_v23  }
  0x64   :  { %397 = vrot.lane.b32.xlu1 %v1083_v12, %s1024_s30 }
  0x67   :  { %997 = vset.pattern.permute.xlu0 %v1019_v25 }
  0x68   :  { %420 = vrot.lane.b32.xlu1 %v1079_v11, %s1024_s30  ;;  %738 = vperm.xlu0 %997, %v1145_v23  }
  0x6c   :  { %422 = vrot.lane.b32.xlu1 %v1094_v15, %s1024_s30  ;;  %998 = vset.pattern.permute.xlu0 %v1025_v29 }
  0x6d   :  { %364 = vperm.xlu0 %998, %v1061_v2  }
  0x70   :  { %446 = vrot.lane.b32.xlu1 %v1075_v10, %s1026_s5 }
  0x71   :  { %745 = vrot.lane.b32.xlu0 %v1190_v30, %s1014_s25 }
  0x74   :  { %448 = vrot.lane.b32.xlu1 %v1083_v12, %s1026_s5 }
  0x75   :  { %810 = vperm.xlu0 %998, %v1145_v23  }
  0x78   :  { %471 = vrot.lane.b32.xlu1 %v1079_v11, %s1026_s5 }
  0x79   :  { %1001 = vset.pattern.permute.xlu0 %v1027_v31 }
  0x7a   :  { %388 = vperm.xlu0 %1001, %v1061_v2   ;;  %v69_v33 = vpop.permute.xlu0 %68 }
  0x7c   :  { %473 = vrot.lane.b32.xlu1 %v1094_v15, %s1026_s5 }
  0x7e   :  { %834 = vperm.xlu0 %1001, %v1145_v23   ;;  %v71_v37 = vpop.permute.xlu0 %70 }
  0x7f   :  { %v73_v38 = vsel %vm72_vm0, %v69_v33, %v71_v37  ;;  %v74_v39 = vsel %vm72_vm0, %v71_v37, %v69_v33 }
  0x80   :  { %497 = vperm.xlu1 %988, %v52_v35   ;;  %v75_v47 = vsel %vm1241_vm4, %v74_v39, 0.0  ;;  %v76_v48 = vsel %vm1233_vm3, %v73_v38, 0.0 }
  0x81   :  { %v89_v41 = vpop.permute.xlu1 %88  ;;  %v81_v51 = vrot.slane %v75_v47, %v1069_v6  ;;  %v85_v52 = vrot.slane %v76_v48, %v1069_v6 }
  0x82   :  { %1002 = vset.pattern.permute.xlu0 %v1028_v43  ;;  %v109_v49 = vpop.permute.xlu0 %108 }
  0x83   :  { %413 = vperm.xlu0 %1002, %v1061_v2   ;;  %v91_v61 = vmul.f32 %v89_v41, %v81_v51  ;;  %v92_v62 = vmul.f32 %v89_v41, %v85_v52 }
  0x84   :  { %524 = vrot.lane.b32.xlu1 %v1190_v30, %s1009_s21 }
  0x86   :  { %v124_v46 = vpop.permute.xlu1 %123  ;;  %v131_v7 = vpop.permute.xlu0 %130 }
  0x87   :  { %858 = vperm.xlu0 %1002, %v1145_v23  }
  0x88   :  { %543 = vperm.xlu1 %988, %v1145_v23  }
  0x8a   :  { %v107_v50 = vpop.permute.xlu1 %106 }
  0x8b   :  { %v110_v53 = vsel %vm72_vm0, %v107_v50, %v109_v49  ;;  %v111_v54 = vsel %vm72_vm0, %v109_v49, %v107_v50  ;;  %1003 = vset.pattern.permute.xlu0 %v1029_v55 }
  0x8c   :  { %v112_v56 = vsel %vm1241_vm4, %v111_v54, 0.0  ;;  %v113_v57 = vsel %vm1233_vm3, %v110_v53, 0.0  ;;  %563 = vrot.lane.b32.xlu1 %v1090_v14, %s1009_s21  ;;  %437 = vperm.xlu0 %1003, %v1061_v2  }
  0x8d   :  { %v117_v58 = vrot.slane %v112_v56, %v1069_v6  ;;  %v121_v59 = vrot.slane %v113_v57, %v1069_v6  ;;  %994 = vset.pattern.permute.xlu1 %v1007_v3 }
  0x8e   :  { %v133_v60 = vpop.permute.xlu1 %132 }
  0x8f   :  { %v126_v63 = vmul.f32 %v124_v46, %v117_v58  ;;  %v127_v0 = vmul.f32 %v124_v46, %v121_v59  ;;  %v136_v38 = vsel %vm134_vm5, %v133_v60, %v131_v7  ;;  %v135_v39 = vsel %vm134_vm5, %v131_v7, %v133_v60 }
  0x90   :  { %585 = vrot.lane.b32.xlu1 %v1190_v30, %s1011_s24  ;;  %882 = vperm.xlu0 %1003, %v1145_v23   ;;  %v137_v41 = vsel %vm44_vm1, %v136_v38, 0.0  ;;  %v146_v46 = vrot.slane %v135_v39, %v1069_v6 }
  0x91   :  { %v128_v1 = vadd.f32 %v126_v63, %v91_v61  ;;  %v129_v4 = vadd.f32 %v127_v0, %v92_v62 }
  0x92   :  { %v156_v5 = vpop.permute.xlu1 %155 }
  0x94   :  { %587 = vrot.lane.b32.xlu1 %v1127_v21, %s1011_s24  ;;  %1004 = vset.pattern.permute.xlu0 %v1030_v8 }
  0x95   :  { %464 = vperm.xlu0 %1004, %v1061_v2  }
  0x96   :  { %v158_v3 = vpop.permute.xlu1 %157 }
  0x97   :  { %v1273_v9 = vpop.permute.xlu0 %223  ;;  %v160_v54 = vsel %vm134_vm5, %v158_v3, %v156_v5  ;;  %v159_v57 = vsel %vm134_vm5, %v156_v5, %v158_v3 }
  0x98   :  { %609 = vrot.lane.b32.xlu1 %v1134_v22, %s1011_s24  ;;  %v161_v58 = vsel %vm44_vm1, %v160_v54, 0.0 }
  0x99   :  { %906 = vperm.xlu0 %1004, %v1145_v23  }
  0x9a   :  { %v182_v13 = vpop.permute.xlu1 %181 }
  0x9c   :  { %611 = vrot.lane.b32.xlu1 %v1090_v14, %s1011_s24  ;;  %v1280_v16 = vpop.permute.xlu0 %248 }
  0x9d   :  { %1005 = vset.pattern.permute.xlu0 %v1031_v19  ;;  %v170_v19 = vrot.slane %v159_v57, %v1069_v6 }
  0x9e   :  { %v184_v24 = vpop.permute.xlu1 %183  ;;  %488 = vperm.xlu0 %1005, %v1061_v2  }
  0x9f   :  { %v186_v60 = vsel %vm185_vm7, %v182_v13, %v184_v24  ;;  %v187_v61 = vsel %vm185_vm7, %v184_v24, %v182_v13  ;;  %v166_v13 = vrot.slane %v161_v58, %v1069_v6 }
  0xa0   :  { %633 = vrot.lane.b32.xlu1 %v1190_v30, %s1012_s1  ;;  %v296_v25 = vpop.permute.xlu0 %295  ;;  %v188_v24 = vsel %vm1358_vm11, %v187_v61, 0.0 }
  0xa1   :  { %v193_v54 = vrot.slane %v188_v24, %v1069_v6 }
  0xa2   :  { %v207_v26 = vpop.permute.xlu1 %206  ;;  %930 = vperm.xlu0 %1005, %v1145_v23  }
  0xa4   :  { %635 = vrot.lane.b32.xlu1 %v1127_v21, %s1012_s1  ;;  %v1288_v27 = vpop.permute.xlu0 %313 }
  0xa6   :  { %v209_v28 = vpop.permute.xlu1 %208  ;;  %913 = vrot.lane.b32.xlu0 %v1134_v22, %s1026_s5 }
  0xa7   :  { %v210_v40 = vsel %vm185_vm7, %v207_v26, %v209_v28  ;;  %v211_v62 = vsel %vm185_vm7, %v209_v28, %v207_v26  ;;  %v189_v26 = vsel %vm1350_vm10, %v186_v60, 0.0 }
  0xa8   :  { %674 = vperm.xlu1 %994, %v1145_v23   ;;  %v197_v57 = vrot.slane %v189_v26, %v1069_v6 }
  0xa9   :  { %v1293_v29 = vpop.permute.xlu0 %337 }
  0xaa   :  { %v231_v2 = vpop.permute.xlu1 %230 }
  0xac   :  { %995 = vset.pattern.permute.xlu1 %v1013_v17 }
  0xad   :  { %698 = vperm.xlu1 %995, %v1145_v23   ;;  %v1297_v31 = vpop.permute.xlu0 %526 }
  0xae   :  { %v233_v33 = vpop.permute.xlu1 %232 }
  0xb1   :  { %659 = vrot.lane.b32.xlu1 %v1090_v14, %s1012_s1  ;;  %v1302_v35 = vpop.permute.xlu0 %561 }
  0xb2   :  { %v1304_v37 = vpop.permute.xlu1 %255  ;;  %999 = vset.pattern.permute.xlu1 %v1015_v18  ;;  %v142_v18 = vrot.slane %v137_v41, %v1069_v6 }
  0xb5   :  { %681 = vrot.lane.b32.xlu1 %v1190_v30, %s1017_s28  ;;  %v1311_v17 = vpop.permute.xlu0 %578 }
  0xb6   :  { %v1317_v43 = vpop.permute.xlu1 %257 }
  0xb9   :  { %683 = vrot.lane.b32.xlu1 %v1127_v21, %s1017_s28 }
  0xba   :  { %v1323_v47 = vpop.permute.xlu1 %280  ;;  %v149_v48 = vpop.permute.xlu0 %148 }
  0xbb   :  { %v151_v49 = vmul.f32 %v149_v48, %v142_v18  ;;  %v152_v50 = vmul.f32 %v149_v48, %v146_v46 }
  0xbd   :  { %v153_v51 = vadd.f32 %v151_v49, %v128_v1  ;;  %v154_v52 = vadd.f32 %v152_v50, %v129_v4  ;;  %705 = vrot.lane.b32.xlu1 %v1134_v22, %s1017_s28  ;;  %v235_v1 = vsel %vm234_vm8, %v231_v2, %v233_v33  ;;  %v236_v4 = vsel %vm234_vm8, %v233_v33, %v231_v2 }
  0xbe   :  { %v1327_v53 = vpop.permute.xlu0 %602  ;;  %v212_v2 = vsel %vm1358_vm11, %v211_v62, 0.0  ;;  %v213_v33 = vsel %vm1350_vm10, %v210_v40, 0.0  ;;  %v237_v38 = vsel %vm1224_vm2, %v236_v4, 0.0  ;;  %v238_v39 = vsel %vm1233_vm3, %v235_v1, 0.0 }
  0xbf   :  { %v1331_v55 = vpop.permute.xlu1 %288  ;;  %v217_v58 = vrot.slane %v212_v2, %v1069_v6  ;;  %v221_v60 = vrot.slane %v213_v33, %v1069_v6  ;;  %v242_v61 = vrot.slane %v237_v38, %v1069_v6  ;;  %v246_v40 = vrot.slane %v238_v39, %v1069_v6 }
  0xc1   :  { %707 = vrot.lane.b32.xlu1 %v1090_v14, %s1017_s28  ;;  %v252_v2 = vmul.f32 %v1280_v16, %v246_v40  ;;  %v283_v40 = vmul.f32 %v1323_v47, %v1075_v10 }
  0xc3   :  { %v298_v63 = vpop.permute.xlu1 %297  ;;  %v173_v0 = vpop.permute.xlu0 %172 }
  0xc4   :  { %v300_v5 = vsel %vm1832_vm9, %v296_v25, %v298_v63  ;;  %v301_v7 = vsel %vm1832_vm9, %v298_v63, %v296_v25  ;;  %v175_v49 = vmul.f32 %v173_v0, %v166_v13  ;;  %v176_v50 = vmul.f32 %v173_v0, %v170_v19 }
  0xc5   :  { %v302_v8 = vsel %vm1335_vm6, %v300_v5, 0.0  ;;  %v303_v3 = vsel %vm1350_vm10, %v301_v7, 0.0  ;;  %762 = vperm.xlu1 %999, %v1145_v23   ;;  %v226_v13 = vmul.f32 %v1273_v9, %v217_v58  ;;  %v227_v19 = vmul.f32 %v1273_v9, %v221_v60 }
  0xc6   :  { %v307_v25 = vrot.slane %v302_v8, %v1069_v6  ;;  %v311_v28 = vrot.slane %v303_v3, %v1069_v6  ;;  %v177_v62 = vadd.f32 %v175_v49, %v153_v51  ;;  %v178_v63 = vadd.f32 %v176_v50, %v154_v52 }
  0xc7   :  { %v321_v41 = vpop.permute.xlu1 %320  ;;  %v1399_v46 = vpop.permute.xlu0 %626  ;;  %v259_v51 = vsel %vm234_vm8, %v1304_v37, %v1317_v43  ;;  %v260_v52 = vsel %vm234_vm8, %v1317_v43, %v1304_v37 }
  0xc8   :  { %v1402_v18 = vmul.f32 %v1288_v27, %v307_v25  ;;  %v1405_v48 = vmul.f32 %v1288_v27, %v311_v28  ;;  %v251_v28 = vmul.f32 %v1280_v16, %v242_v61  ;;  %v261_v38 = vsel %vm1224_vm2, %v260_v52, 0.0 }
  0xc9   :  { %1000 = vset.pattern.permute.xlu1 %v1016_v20  ;;  %v262_v9 = vsel %vm1233_vm3, %v259_v51, 0.0 }
  0xca   :  { %786 = vperm.xlu1 %1000, %v1145_v23  }
  0xcb   :  { %v323_v27 = vpop.permute.xlu1 %322 }
  0xcc   :  { %v324_v20 = vsel %vm1832_vm9, %v321_v41, %v323_v27  ;;  %v325_v23 = vsel %vm1832_vm9, %v323_v27, %v321_v41  ;;  %v200_v0 = vpop.permute.xlu0 %199  ;;  %v284_v27 = vmul.f32 %v1323_v47, %v1083_v12  ;;  %vm450_vm9 = vcmp.lt.s32.totalorder %v1202_v32, 111 }
  0xcd   :  { %v326_v1 = vsel %vm1335_vm6, %v324_v20, 0.0  ;;  %v327_v4 = vsel %vm1350_vm10, %v325_v23, 0.0  ;;  %v202_v5 = vmul.f32 %v200_v0, %v193_v54  ;;  %v203_v7 = vmul.f32 %v200_v0, %v197_v57 }
  0xce   :  { %v331_v8 = vrot.slane %v326_v1, %v1069_v6  ;;  %v335_v3 = vrot.slane %v327_v4, %v1069_v6  ;;  %747 = vrot.lane.b32.xlu1 %v1127_v21, %s1014_s25  ;;  %v266_v54 = vrot.slane %v261_v38, %v1069_v6  ;;  %v291_v23 = vmul.f32 %v1331_v55, %v1079_v11 }
  0xcf   :  { %v204_v24 = vadd.f32 %v202_v5, %v177_v62  ;;  %v205_v26 = vadd.f32 %v203_v7, %v178_v63  ;;  %v1437_v25 = vpop.permute.xlu1 %346  ;;  %v292_v0 = vmul.f32 %v1331_v55, %v1094_v15 }
  0xd0   :  { %v340_v37 = vmul.f32 %v1293_v29, %v331_v8  ;;  %v341_v43 = vmul.f32 %v1293_v29, %v335_v3  ;;  %v1443_v33 = vpop.permute.xlu0 %650  ;;  %v270_v29 = vrot.slane %v262_v9, %v1069_v6 }
  0xd1   :  { %v228_v39 = vadd.f32 %v226_v13, %v204_v24  ;;  %v229_v41 = vadd.f32 %v227_v19, %v205_v26 }
  0xd2   :  { %769 = vrot.lane.b32.xlu1 %v1134_v22, %s1014_s25 }
  0xd3   :  { %v1451_v49 = vpop.permute.xlu1 %348  ;;  %v253_v16 = vadd.f32 %v251_v28, %v228_v39  ;;  %v254_v50 = vadd.f32 %v252_v2, %v229_v41 }
  0xd5   :  { %v273_v57 = vpop.permute.xlu0 %272 }
  0xd6   :  { %v275_v58 = vmul.f32 %v273_v57, %v266_v54  ;;  %v276_v60 = vmul.f32 %v273_v57, %v270_v29  ;;  %771 = vrot.lane.b32.xlu1 %v1090_v14, %s1014_s25  ;;  %v351_v54 = vsel %vm350_vm12, %v1437_v25, %v1451_v49 }
  0xd7   :  { %v1457_v61 = vpop.permute.xlu1 %371 }
  0xd8   :  { %v277_v62 = vadd.f32 %v275_v58, %v253_v16  ;;  %v278_v63 = vadd.f32 %v276_v60, %v254_v50 }
  0xd9   :  { %v1463_v20 = vpop.permute.xlu0 %657 }
  0xda   :  { %v285_v1 = vadd.f32 %v283_v40, %v277_v62  ;;  %v286_v4 = vadd.f32 %v284_v27, %v278_v63  ;;  %793 = vrot.lane.b32.xlu1 %v1190_v30, %s1022_s2  ;;  %v353_v63 = vsel %vm1224_vm2, %v351_v54, 0.0 }
  0xdb   :  { %v374_v5 = vpop.permute.xlu1 %373 }
  0xdc   :  { %v293_v10 = vadd.f32 %v291_v23, %v285_v1  ;;  %v294_v7 = vadd.f32 %v292_v0, %v286_v4 }
  0xdd   :  { %v1471_v51 = vpop.permute.xlu0 %722 }
  0xde   :  { %795 = vrot.lane.b32.xlu1 %v1127_v21, %s1022_s2  ;;  %v318_v12 = vadd.f32 %v1402_v18, %v293_v10  ;;  %v319_v11 = vadd.f32 %v1405_v48, %v294_v7  ;;  %v358_v10 = vrot.slane %v353_v63, %v1069_v6 }
  0xdf   :  { %v1477_v47 = vpop.permute.xlu1 %395 }
  0xe0   :  { %v1479_v15 = vadd.f32 %v340_v37, %v318_v12  ;;  %v1481_v55 = vadd.f32 %v341_v43, %v319_v11 }
  0xe2   :  { %v1483_v52 = vpop.permute.xlu0 %730  ;;  %817 = vrot.lane.b32.xlu1 %v1134_v22, %s1022_s2 }
  0xe3   :  { %v398_v8 = vpop.permute.xlu1 %397 }
  0xe4   :  { %v401_v4 = vsel %vm399_vm15, %v398_v8, %v1477_v47 }
  0xe6   :  { %819 = vrot.lane.b32.xlu1 %v1090_v14, %s1022_s2 }
  0xe7   :  { %v421_v3 = vpop.permute.xlu1 %420  ;;  %v1489_v13 = vpop.permute.xlu0 %738 }
  0xe8   :  { %v741_v44 = vmul.f32 %v1489_v13, %v1134_v22 }
  0xea   :  { %841 = vrot.lane.b32.xlu1 %v1190_v30, %s1024_s30 }
  0xeb   :  { %v423_v18 = vpop.permute.xlu1 %422 }
  0xec   :  { %v365_v48 = vpop.permute.xlu0 %364  ;;  %v425_v11 = vsel %vm399_vm15, %v423_v18, %v421_v3 }
  0xed   :  { %v427_v45 = vsel %vm47_vm13, %v425_v11, 0.0 }
  0xee   :  { %843 = vrot.lane.b32.xlu1 %v1127_v21, %s1024_s30 }
  0xef   :  { %v1495_v19 = vpop.permute.xlu1 %446 }
  0xf0   :  { %v1497_v24 = vpop.permute.xlu0 %745 }
  0xf2   :  { %865 = vrot.lane.b32.xlu1 %v1134_v22, %s1024_s30 }
  0xf3   :  { %v1501_v26 = vpop.permute.xlu1 %448 }
  0xf4   :  { %v1503_v28 = vpop.permute.xlu0 %810 }
  0xf6   :  { %867 = vrot.lane.b32.xlu1 %v1090_v14, %s1024_s30 }
  0xf7   :  { %v1507_v2 = vpop.permute.xlu1 %471 }
  0xf9   :  { %v1509_v37 = vpop.permute.xlu0 %388 }
  0xfa   :  { %889 = vrot.lane.b32.xlu1 %v1190_v30, %s1026_s5 }
  0xfb   :  { %v1513_v43 = vpop.permute.xlu1 %473 }
  0xfd   :  { %v1515_v38 = vpop.permute.xlu0 %834 }
  0xfe   :  { %891 = vrot.lane.b32.xlu1 %v1127_v21, %s1026_s5 }
  0xff   :  { %v1519_v9 = vpop.permute.xlu1 %497 }
 0x102   :  { %v1522_v39 = vpop.permute.xlu0 %413  ;;  %915 = vrot.lane.b32.xlu1 %v1090_v14, %s1026_s5 }
 0x103   :  { %v525_v41 = vpop.permute.xlu1 %524 }
 0x104   :  { %v528_v16 = vsel %vm72_vm0, %v525_v41, %v1297_v31  ;;  %v529_v50 = vsel %vm72_vm0, %v1297_v31, %v525_v41  ;;  %v352_v31 = vsel %vm350_vm12, %v1451_v49, %v1437_v25  ;;  %v375_v25 = vsel %vm350_vm12, %v1457_v61, %v374_v5 }
 0x105   :  { %v530_v29 = vsel %vm1241_vm4, %v529_v50, 0.0  ;;  %v531_v57 = vsel %vm1233_vm3, %v528_v16, 0.0  ;;  %v354_v1 = vsel %vm1545_vm14, %v352_v31, 0.0  ;;  %v376_v49 = vsel %vm350_vm12, %v374_v5, %v1457_v61 }
 0x106   :  { %v536_v60 = vrot.slane %v530_v29, %v1069_v6  ;;  %v540_v40 = vrot.slane %v531_v57, %v1069_v6  ;;  %v1555_v27 = vpop.permute.xlu0 %858  ;;  %v362_v41 = vrot.slane %v354_v1, %v1069_v6  ;;  %v377_v5 = vsel %vm1224_vm2, %v375_v25, 0.0 }
 0x107   :  { %v544_v62 = vpop.permute.xlu1 %543  ;;  %v378_v50 = vsel %vm1545_vm14, %v376_v49, 0.0  ;;  %v400_v57 = vsel %vm399_vm15, %v1477_v47, %v398_v8  ;;  %v403_v31 = vsel %vm47_vm13, %v401_v4, 0.0  ;;  %v451_v47 = vsel %vm450_vm9, %v1495_v19, %v1501_v26 }
 0x108   :  { %v546_v23 = vmul.f32 %v544_v62, %v536_v60  ;;  %v547_v0 = vmul.f32 %v544_v62, %v540_v40  ;;  %v424_v40 = vsel %vm399_vm15, %v421_v3, %v423_v18  ;;  %v367_v62 = vmul.f32 %v365_v48, %v358_v10 }
 0x109   :  { %v368_v63 = vmul.f32 %v365_v48, %v362_v41  ;;  %v382_v8 = vrot.slane %v377_v5, %v1069_v6  ;;  %v407_v3 = vrot.slane %v400_v57, %v1069_v6  ;;  %v452_v48 = vsel %vm450_vm9, %v1501_v26, %v1495_v19 }
 0x10a   :  { %v386_v10 = vrot.slane %v378_v50, %v1069_v6 }
 0x10b   :  { %v564_v7 = vpop.permute.xlu1 %563  ;;  %v438_v12 = vpop.permute.xlu0 %437  ;;  %v370_v5 = vadd.f32 %v368_v63, %v1481_v55  ;;  %v475_v55 = vsel %vm450_vm9, %v1507_v2, %v1513_v43  ;;  %v416_v57 = vmul.f32 %v1522_v39, %v407_v3 }
 0x10c   :  { %v565_v16 = vsel %vm72_vm0, %v1302_v35, %v564_v7  ;;  %v566_v61 = vsel %vm72_vm0, %v564_v7, %v1302_v35  ;;  %vm1615_vm0 = vmand %vm47_vm13, %vm1350_vm10  ;;  %v411_v7 = vrot.slane %v403_v31, %v1069_v6  ;;  %v392_v50 = vmul.f32 %v1509_v37, %v386_v10 }
 0x10d   :  { %v567_v54 = vsel %vm1241_vm4, %v566_v61, 0.0  ;;  %v568_v29 = vsel %vm1233_vm3, %v565_v16, 0.0  ;;  %v435_v16 = vrot.slane %v427_v45, %v1069_v6  ;;  %v369_v61 = vadd.f32 %v367_v62, %v1479_v15 }
 0x10e   :  { %v572_v35 = vrot.slane %v567_v54, %v1069_v6  ;;  %v576_v60 = vrot.slane %v568_v29, %v1069_v6  ;;  %v453_v54 = vsel %vm1335_vm6, %v451_v47, 0.0  ;;  %v391_v29 = vmul.f32 %v1509_v37, %v382_v8 }
 0x10f   :  { %v586_v1 = vpop.permute.xlu1 %585  ;;  %v1601_v25 = vpop.permute.xlu0 %882  ;;  %v454_v26 = vsel %vm1615_vm0, %v452_v48, 0.0  ;;  %v476_v37 = vsel %vm450_vm9, %v1513_v43, %v1507_v2  ;;  %v458_v45 = vrot.slane %v453_v54, %v1069_v6  ;;  %v441_v3 = vmul.f32 %v438_v12, %v435_v16 }
 0x110   :  { %v581_v49 = vmul.f32 %v1311_v17, %v572_v35  ;;  %v582_v4 = vmul.f32 %v1311_v17, %v576_v60  ;;  %v431_v17 = vrot.slane %v424_v40, %v1069_v6  ;;  %v417_v60 = vmul.f32 %v1522_v39, %v411_v7 }
 0x111   :  { %v393_v62 = vadd.f32 %v391_v29, %v369_v61  ;;  %v462_v47 = vrot.slane %v454_v26, %v1069_v6  ;;  %v478_v39 = vsel %vm1615_vm0, %v476_v37, 0.0 }
 0x112   :  { %v583_v11 = vadd.f32 %v581_v49, %v546_v23  ;;  %v584_v41 = vadd.f32 %v582_v4, %v547_v0  ;;  %v440_v63 = vmul.f32 %v438_v12, %v431_v17  ;;  %v394_v49 = vadd.f32 %v392_v50, %v370_v5 }
 0x113   :  { %v588_v19 = vpop.permute.xlu1 %587  ;;  %v477_v4 = vsel %vm1335_vm6, %v475_v55, 0.0  ;;  %v418_v48 = vadd.f32 %v416_v57, %v393_v62  ;;  %v486_v16 = vrot.slane %v478_v39, %v1069_v6 }
 0x114   :  { %v589_v23 = vsel %vm134_vm5, %v586_v1, %v588_v19  ;;  %v590_v0 = vsel %vm134_vm5, %v588_v19, %v586_v1  ;;  %v465_v15 = vpop.permute.xlu0 %464  ;;  %v419_v17 = vadd.f32 %v417_v60, %v394_v49  ;;  %v482_v5 = vrot.slane %v477_v4, %v1069_v6 }
 0x115   :  { %v591_v31 = vsel %vm44_vm1, %v590_v0, 0.0  ;;  %v600_v35 = vrot.slane %v589_v23, %v1069_v6  ;;  %v467_v7 = vmul.f32 %v465_v15, %v458_v45  ;;  %v468_v54 = vmul.f32 %v465_v15, %v462_v47 }
 0x116   :  { %v596_v40 = vrot.slane %v591_v31, %v1069_v6  ;;  %v442_v29 = vadd.f32 %v440_v63, %v418_v48  ;;  %v443_v26 = vadd.f32 %v441_v3, %v419_v17 }
 0x117   :  { %v606_v1 = vmul.f32 %v1327_v53, %v600_v35  ;;  %v610_v8 = vpop.permute.xlu1 %609 }
 0x118   :  { %v605_v2 = vmul.f32 %v1327_v53, %v596_v40  ;;  %v1659_v43 = vpop.permute.xlu0 %906  ;;  %v469_v50 = vadd.f32 %v467_v7, %v442_v29  ;;  %v470_v0 = vadd.f32 %v468_v54, %v443_v26 }
 0x119   :  { %v608_v10 = vadd.f32 %v606_v1, %v584_v41 }
 0x11a   :  { %v607_v61 = vadd.f32 %v605_v2, %v583_v11 }
 0x11b   :  { %v612_v19 = vpop.permute.xlu1 %611 }
 0x11c   :  { %v613_v12 = vsel %vm134_vm5, %v610_v8, %v612_v19  ;;  %v614_v53 = vsel %vm134_vm5, %v612_v19, %v610_v8 }
 0x11d   :  { %v615_v41 = vsel %vm44_vm1, %v614_v53, 0.0  ;;  %v624_v11 = vrot.slane %v613_v12, %v1069_v6  ;;  %v489_v23 = vpop.permute.xlu0 %488  ;;  %vm1849_vm1 = vcmp.lt.s32.totalorder %v1202_v32, 127 }
 0x11e   :  { %v620_v15 = vrot.slane %v615_v41, %v1069_v6  ;;  %v491_v55 = vmul.f32 %v489_v23, %v482_v5  ;;  %v492_v57 = vmul.f32 %v489_v23, %v486_v16  ;;  %vm1851_vm4 = vmmov %vm1849_vm1 }
 0x11f   :  { %v630_v31 = vmul.f32 %v1399_v46, %v624_v11  ;;  %v634_v35 = vpop.permute.xlu1 %633  ;;  %vm1852_vm5 = vmmov %vm1849_vm1 }
 0x120   :  { %v629_v37 = vmul.f32 %v1399_v46, %v620_v15  ;;  %v493_v60 = vadd.f32 %v491_v55, %v469_v50  ;;  %v494_v40 = vadd.f32 %v492_v57, %v470_v0 }
 0x121   :  { %v632_v45 = vadd.f32 %v630_v31, %v608_v10 }
 0x122   :  { %v631_v62 = vadd.f32 %v629_v37, %v607_v61  ;;  %v500_v63 = vadd.f32 %v1519_v9, %v493_v60  ;;  %v501_v1 = vadd.f32 %v1519_v9, %v494_v40 }
 0x123   :  { %v636_v47 = vpop.permute.xlu1 %635 }
 0x124   :  { %v502_v8 = vmax.f32 %v500_v63, 0.0  ;;  %v503_v49 = vmax.f32 %v501_v1, 0.0  ;;  %v637_v4 = vsel %vm185_vm7, %v634_v35, %v636_v47  ;;  %v638_v3 = vsel %vm185_vm7, %v636_v47, %v634_v35 }
 0x125   :  { %v639_v46 = vsel %vm1358_vm11, %v638_v3, 0.0  ;;  %v640_v2 = vsel %vm1350_vm10, %v637_v4, 0.0 }
 0x126   :  { %v506_v39 = vcombine.low %v502_v8, %v503_v49  ;;  %v644_v48 = vrot.slane %v639_v46, %v1069_v6  ;;  %v648_v10 = vrot.slane %v640_v2, %v1069_v6 }
 0x127   :  { %v675_v7 = vpop.permute.xlu1 %674 }
 0x128   :  { %508 = vst [vmem:[%s1831_s4] sm:$0xff] %v506_v39  ;;  %v653_v17 = vmul.f32 %v1443_v33, %v644_v48  ;;  %v654_v61 = vmul.f32 %v1443_v33, %v648_v10  ;;  %v733_v10 = vmul.f32 %v1483_v52, %v1190_v30 }
 0x12a   :  { %v655_v54 = vadd.f32 %v653_v17, %v631_v62  ;;  %v656_v29 = vadd.f32 %v654_v61, %v632_v45 }
 0x12c   :  { %v699_v19 = vpop.permute.xlu1 %698 }
 0x130   :  { %v660_v5 = vpop.permute.xlu1 %659 }
 0x131   :  { %v661_v26 = vsel %vm185_vm7, %v1463_v20, %v660_v5  ;;  %v662_v12 = vsel %vm185_vm7, %v660_v5, %v1463_v20 }
 0x132   :  { %v663_v53 = vsel %vm1358_vm11, %v662_v12, 0.0  ;;  %v664_v16 = vsel %vm1350_vm10, %v661_v26, 0.0 }
 0x133   :  { %v668_v33 = vrot.slane %v663_v53, %v1069_v6  ;;  %v672_v50 = vrot.slane %v664_v16, %v1069_v6 }
 0x134   :  { %v682_v41 = vpop.permute.xlu1 %681 }
 0x135   :  { %v677_v11 = vmul.f32 %v675_v7, %v668_v33  ;;  %v678_v23 = vmul.f32 %v675_v7, %v672_v50  ;;  %v734_v7 = vmul.f32 %v1483_v52, %v1127_v21 }
 0x137   :  { %v679_v0 = vadd.f32 %v677_v11, %v655_v54  ;;  %v680_v15 = vadd.f32 %v678_v23, %v656_v29  ;;  %v742_v54 = vmul.f32 %v1489_v13, %v1090_v14 }
 0x138   :  { %v684_v55 = vpop.permute.xlu1 %683 }
 0x139   :  { %v685_v57 = vsel %vm234_vm8, %v682_v41, %v684_v55  ;;  %v686_v59 = vsel %vm234_vm8, %v684_v55, %v682_v41 }
 0x13a   :  { %v687_v20 = vsel %vm1224_vm2, %v686_v59, 0.0  ;;  %v688_v31 = vsel %vm1233_vm3, %v685_v57, 0.0 }
 0x13b   :  { %v692_v35 = vrot.slane %v687_v20, %v1069_v6  ;;  %v696_v37 = vrot.slane %v688_v31, %v1069_v6 }
 0x13c   :  { %v706_v60 = vpop.permute.xlu1 %705 }
 0x13d   :  { %v701_v40 = vmul.f32 %v699_v19, %v692_v35  ;;  %v702_v45 = vmul.f32 %v699_v19, %v696_v37 }
 0x13f   :  { %v703_v62 = vadd.f32 %v701_v40, %v679_v0  ;;  %v704_v63 = vadd.f32 %v702_v45, %v680_v15 }
 0x140   :  { %v708_v1 = vpop.permute.xlu1 %707 }
 0x141   :  { %v709_v47 = vsel %vm234_vm8, %v706_v60, %v708_v1  ;;  %v710_v8 = vsel %vm234_vm8, %v708_v1, %v706_v60 }
 0x142   :  { %v711_v49 = vsel %vm1224_vm2, %v710_v8, 0.0  ;;  %v712_v4 = vsel %vm1233_vm3, %v709_v47, 0.0  ;;  %vm1850_vm3 = vmmov %vm1849_vm1 }
 0x143   :  { %v716_v3 = vrot.slane %v711_v49, %v1069_v6  ;;  %v720_v46 = vrot.slane %v712_v4, %v1069_v6 }
 0x144   :  { %v763_v2 = vpop.permute.xlu1 %762 }
 0x145   :  { %v725_v39 = vmul.f32 %v1471_v51, %v716_v3  ;;  %v726_v48 = vmul.f32 %v1471_v51, %v720_v46 }
 0x147   :  { %v727_v17 = vadd.f32 %v725_v39, %v703_v62  ;;  %v728_v61 = vadd.f32 %v726_v48, %v704_v63 }
 0x149   :  { %v735_v29 = vadd.f32 %v733_v10, %v727_v17  ;;  %v736_v19 = vadd.f32 %v734_v7, %v728_v61  ;;  %v787_v5 = vpop.permute.xlu1 %786 }
 0x14b   :  { %v743_v26 = vadd.f32 %v741_v44, %v735_v29  ;;  %v744_v12 = vadd.f32 %v742_v54, %v736_v19 }
 0x14d   :  { %v748_v51 = vpop.permute.xlu1 %747 }
 0x14e   :  { %v749_v52 = vsel %vm1849_vm1, %v1497_v24, %v748_v51  ;;  %v750_v14 = vsel %vm1850_vm3, %v748_v51, %v1497_v24 }
 0x14f   :  { %v751_v13 = vsel %vm1335_vm6, %v749_v52, 0.0  ;;  %v752_v41 = vsel %vm1350_vm10, %v750_v14, 0.0 }
 0x150   :  { %v756_v15 = vrot.slane %v751_v13, %v1069_v6  ;;  %v760_v57 = vrot.slane %v752_v41, %v1069_v6 }
 0x151   :  { %v770_v53 = vpop.permute.xlu1 %769 }
 0x152   :  { %v765_v45 = vmul.f32 %v763_v2, %v756_v15  ;;  %v766_v62 = vmul.f32 %v763_v2, %v760_v57 }
 0x154   :  { %v767_v17 = vadd.f32 %v765_v45, %v743_v26  ;;  %v768_v61 = vadd.f32 %v766_v62, %v744_v12 }
 0x155   :  { %v772_v16 = vpop.permute.xlu1 %771 }
 0x156   :  { %v773_v11 = vsel %vm1851_vm4, %v770_v53, %v772_v16  ;;  %v774_v23 = vsel %vm1852_vm5, %v772_v16, %v770_v53 }
 0x157   :  { %v775_v59 = vsel %vm1335_vm6, %v773_v11, 0.0  ;;  %v776_v20 = vsel %vm1350_vm10, %v774_v23, 0.0 }
 0x158   :  { %v780_v63 = vrot.slane %v775_v59, %v1069_v6  ;;  %v784_v36 = vrot.slane %v776_v20, %v1069_v6 }
 0x159   :  { %v794_v30 = vpop.permute.xlu1 %793 }
 0x15a   :  { %v789_v48 = vmul.f32 %v787_v5, %v780_v63  ;;  %v790_v10 = vmul.f32 %v787_v5, %v784_v36 }
 0x15c   :  { %v791_v53 = vadd.f32 %v789_v48, %v767_v17  ;;  %v792_v16 = vadd.f32 %v790_v10, %v768_v61 }
 0x15d   :  { %v796_v33 = vpop.permute.xlu1 %795 }
 0x15e   :  { %v797_v55 = vsel %vm350_vm12, %v794_v30, %v796_v33  ;;  %v798_v24 = vsel %vm350_vm12, %v796_v33, %v794_v30  ;;  %v931_v30 = vpop.permute.xlu0 %930 }
 0x15f   :  { %v799_v31 = vsel %vm1224_vm2, %v797_v55, 0.0  ;;  %v800_v35 = vsel %vm1545_vm14, %v798_v24, 0.0 }
 0x160   :  { %v804_v47 = vrot.slane %v799_v31, %v1069_v6  ;;  %v808_v8 = vrot.slane %v800_v35, %v1069_v6 }
 0x161   :  { %v818_v50 = vpop.permute.xlu1 %817 }
 0x162   :  { %v813_v58 = vmul.f32 %v1503_v28, %v804_v47  ;;  %v814_v44 = vmul.f32 %v1503_v28, %v808_v8 }
 0x165   :  { %v820_v21 = vpop.permute.xlu1 %819 }
 0x166   :  { %v821_v37 = vsel %vm350_vm12, %v818_v50, %v820_v21  ;;  %v822_v60 = vsel %vm350_vm12, %v820_v21, %v818_v50  ;;  %v815_v50 = vadd.f32 %v813_v58, %v791_v53  ;;  %v816_v21 = vadd.f32 %v814_v44, %v792_v16 }
 0x167   :  { %v823_v49 = vsel %vm1224_vm2, %v821_v37, 0.0  ;;  %v824_v4 = vsel %vm1545_vm14, %v822_v60, 0.0 }
 0x168   :  { %v828_v7 = vrot.slane %v823_v49, %v1069_v6  ;;  %v832_v42 = vrot.slane %v824_v4, %v1069_v6 }
 0x169   :  { %v842_v22 = vpop.permute.xlu1 %841 }
 0x16a   :  { %v837_v26 = vmul.f32 %v1515_v38, %v828_v7  ;;  %v838_v12 = vmul.f32 %v1515_v38, %v832_v42 }
 0x16c   :  { %v839_v41 = vadd.f32 %v837_v26, %v815_v50  ;;  %v840_v38 = vadd.f32 %v838_v12, %v816_v21 }
 0x16d   :  { %v844_v0 = vpop.permute.xlu1 %843 }
 0x16e   :  { %v846_v1 = vsel %vm399_vm15, %v844_v0, %v842_v22  ;;  %v845_v46 = vsel %vm399_vm15, %v842_v22, %v844_v0  ;;  %v914_v0 = vpop.permute.xlu0 %913 }
 0x16f   :  { %v848_v2 = vsel %vm47_vm13, %v846_v1, 0.0  ;;  %v852_v54 = vrot.slane %v845_v46, %v1069_v6 }
 0x170   :  { %v856_v29 = vrot.slane %v848_v2, %v1069_v6 }
 0x171   :  { %v866_v40 = vpop.permute.xlu1 %865  ;;  %v861_v52 = vmul.f32 %v1555_v27, %v852_v54 }
 0x172   :  { %v862_v14 = vmul.f32 %v1555_v27, %v856_v29 }
 0x173   :  { %v863_v57 = vadd.f32 %v861_v52, %v839_v41 }
 0x174   :  { %v864_v59 = vadd.f32 %v862_v14, %v840_v38 }
 0x175   :  { %v868_v3 = vpop.permute.xlu1 %867 }
 0x176   :  { %v870_v39 = vsel %vm399_vm15, %v868_v3, %v866_v40  ;;  %v869_v19 = vsel %vm399_vm15, %v866_v40, %v868_v3 }
 0x177   :  { %v872_v5 = vsel %vm47_vm13, %v870_v39, 0.0  ;;  %v876_v28 = vrot.slane %v869_v19, %v1069_v6 }
 0x178   :  { %v880_v33 = vrot.slane %v872_v5, %v1069_v6 }
 0x179   :  { %v890_v51 = vpop.permute.xlu1 %889  ;;  %v885_v15 = vmul.f32 %v1601_v25, %v876_v28 }
 0x17a   :  { %v886_v27 = vmul.f32 %v1601_v25, %v880_v33 }
 0x17b   :  { %v887_v45 = vadd.f32 %v885_v15, %v863_v57 }
 0x17c   :  { %v888_v62 = vadd.f32 %v886_v27, %v864_v59 }
 0x17d   :  { %v892_v34 = vpop.permute.xlu1 %891 }
 0x17e   :  { %v893_v22 = vsel %vm450_vm9, %v890_v51, %v892_v34  ;;  %v894_v13 = vsel %vm450_vm9, %v892_v34, %v890_v51 }
 0x17f   :  { %v895_v11 = vsel %vm1335_vm6, %v893_v22, 0.0  ;;  %v896_v23 = vsel %vm1615_vm0, %v894_v13, 0.0 }
 0x180   :  { %v900_v55 = vrot.slane %v895_v11, %v1069_v6  ;;  %v904_v24 = vrot.slane %v896_v23, %v1069_v6 }
 0x181   :  { %v916_v20 = vpop.permute.xlu1 %915 }
 0x182   :  { %v909_v31 = vmul.f32 %v1659_v43, %v900_v55  ;;  %v910_v35 = vmul.f32 %v1659_v43, %v904_v24  ;;  %v917_v37 = vsel %vm450_vm9, %v914_v0, %v916_v20  ;;  %v918_v60 = vsel %vm450_vm9, %v916_v20, %v914_v0 }
 0x183   :  { %v919_v25 = vsel %vm1335_vm6, %v917_v37, 0.0  ;;  %v920_v40 = vsel %vm1615_vm0, %v918_v60, 0.0 }
 0x184   :  { %v924_v63 = vrot.slane %v919_v25, %v1069_v6  ;;  %v928_v36 = vrot.slane %v920_v40, %v1069_v6  ;;  %v911_v1 = vadd.f32 %v909_v31, %v887_v45  ;;  %v912_v43 = vadd.f32 %v910_v35, %v888_v62 }
 0x186   :  { %v933_v47 = vmul.f32 %v931_v30, %v924_v63  ;;  %v934_v8 = vmul.f32 %v931_v30, %v928_v36 }
 0x188   :  { %v935_v49 = vadd.f32 %v933_v47, %v911_v1  ;;  %v936_v4 = vadd.f32 %v934_v8, %v912_v43 }
 0x18a   :  { %v937_v32 = vadd.f32 %v935_v49, %v1519_v9  ;;  %v938_v56 = vadd.f32 %v936_v4, %v1519_v9 }
 0x18c   :  { %v939_v3 = vmax.f32 %v937_v32, 0.0  ;;  %v940_v46 = vmax.f32 %v938_v56, 0.0 }
 0x18e   :  { %v943_v18 = vcombine.low %v939_v3, %v940_v46 }
 0x190   :  { %953 = vst [vmem:[%s1831_s4 + $0x8] sm:$0xff] %v943_v18 }

</bundles_post_ra>
